<compile_context>
chip_gen: v5e
topology: v5e:2x2
jax: 0.10.0
libtpu: 0.0.40
codegen_flags: <defaults>
</compile_context>

<pallas_src>
import functools

import jax
import jax.numpy as jnp
from jax import lax
from jax.experimental import pallas as pl
from jax.experimental.pallas import tpu as pltpu

_LANE = 128


def _round_up(x, m):
    return (x + m - 1) // m * m


def _cdiv(a, b):
    return -(-a // b)


def _pad_to(a, shape):
    pads = [(0, t - s) for s, t in zip(a.shape, shape)]
    if all(p == (0, 0) for p in pads):
        return a
    return jnp.pad(a, pads)


def _chip_config():
    """Per-generation (tile_m cap, vmem_limit_bytes)."""
    try:
        kind = jax.devices()[0].device_kind.lower()
    except Exception:
        kind = ""
    if "v5" in kind or "v6" in kind:
        # 128 MiB physical VMEM: bigger tiles amortize per-grid-step overhead.
        return 1024, 64 * 1024 * 1024
    # v7x (64 MiB VMEM per TC) and unknown chips: stay conservative.
    return 512, 48 * 1024 * 1024


def _choose_tile_m(m, cap):
    # Balance tiles so padding waste is bounded (no near-2x overshoot when m
    # is just above a multiple of `cap`).
    if m <= cap:
        return _round_up(max(m, 8), 8)
    n_tiles = _cdiv(m, cap)
    return _round_up(_cdiv(m, n_tiles), 8)


# ----------------------------------------------------------------------------
# Pass 1: (patches @ weight) in bf16 on the MXU with f32 accumulation, writing
# the bf16 result plus a per-tile (8, C) partial-stats block
# (row 0 = sum, row 1 = sum of squares, rows 2..7 = 0).  No carried state ->
# the grid axis is fully parallel (megacore-shardable on v7x).
# Zero-padded M rows contribute exactly zero to the stats (no bias is added),
# so no row masking is needed.
# ----------------------------------------------------------------------------
def _mm_stats_body(x_ref, w_ref, y_ref, st_ref):
    y = jnp.dot(x_ref[...], w_ref[...], preferred_element_type=jnp.float32)
    y_ref[...] = y.astype(y_ref.dtype)
    s = jnp.sum(y, axis=0, keepdims=True)            # (1, C)
    ss = jnp.sum(y * y, axis=0, keepdims=True)       # (1, C)
    zpad = jnp.zeros((6, y.shape[1]), jnp.float32)
    st_ref[...] = jnp.concatenate([s, ss, zpad], axis=0)[None]


def _pass1_kernel_single(x_ref, w_ref, y_ref, st_ref):
    _mm_stats_body(x_ref, w_ref, y_ref, st_ref)


def _pass1_kernel_fused(x_ref, w_ref, xs_ref, ws_ref,
                        y_ref, st_ref, ys_ref, sts_ref):
    _mm_stats_body(x_ref, w_ref, y_ref, st_ref)      # main branch (conv2)
    _mm_stats_body(xs_ref, ws_ref, ys_ref, sts_ref)  # 1x1 shortcut conv


def matmul_stats(patches, w2d, *, tile_m, vmem_limit,
                 out_dtype=jnp.bfloat16, shortcut=None):
    m_pad, k_pad = patches.shape
    c_pad = w2d.shape[1]
    n_tiles = m_pad // tile_m
    grid = (n_tiles,)

    in_specs = [
        pl.BlockSpec((tile_m, k_pad), lambda i: (i, 0)),
        pl.BlockSpec((k_pad, c_pad), lambda i: (0, 0)),        # resident
    ]
    out_specs = [
        pl.BlockSpec((tile_m, c_pad), lambda i: (i, 0)),
        pl.BlockSpec((1, 8, c_pad), lambda i: (i, 0, 0)),      # partial stats
    ]
    out_shape = [
        jax.ShapeDtypeStruct((m_pad, c_pad), out_dtype),
        jax.ShapeDtypeStruct((n_tiles, 8, c_pad), jnp.float32),
    ]
    args = [patches, w2d]
    flops = 2 * m_pad * k_pad * c_pad
    bytes_acc = (m_pad * k_pad * patches.dtype.itemsize
                 + k_pad * c_pad * w2d.dtype.itemsize
                 + m_pad * c_pad * jnp.dtype(out_dtype).itemsize
                 + n_tiles * 8 * c_pad * 4)
    kernel = _pass1_kernel_single

    if shortcut is not None:
        xs, ws = shortcut
        ks_pad = xs.shape[1]
        in_specs += [
            pl.BlockSpec((tile_m, ks_pad), lambda i: (i, 0)),
            pl.BlockSpec((ks_pad, c_pad), lambda i: (0, 0)),   # resident
        ]
        out_specs += [
            pl.BlockSpec((tile_m, c_pad), lambda i: (i, 0)),
            pl.BlockSpec((1, 8, c_pad), lambda i: (i, 0, 0)),
        ]
        out_shape += [
            jax.ShapeDtypeStruct((m_pad, c_pad), out_dtype),
            jax.ShapeDtypeStruct((n_tiles, 8, c_pad), jnp.float32),
        ]
        args += [xs, ws]
        flops += 2 * m_pad * ks_pad * c_pad
        bytes_acc += (m_pad * ks_pad * xs.dtype.itemsize
                      + ks_pad * c_pad * ws.dtype.itemsize
                      + m_pad * c_pad * jnp.dtype(out_dtype).itemsize
                      + n_tiles * 8 * c_pad * 4)
        kernel = _pass1_kernel_fused

    return pl.pallas_call(
        kernel,
        grid_spec=pltpu.PrefetchScalarGridSpec(
            num_scalar_prefetch=0, grid=grid,
            in_specs=in_specs, out_specs=out_specs),
        out_shape=tuple(out_shape),
        compiler_params=pltpu.CompilerParams(
            dimension_semantics=("parallel",),     # no carry -> megacore OK
            vmem_limit_bytes=vmem_limit),
        cost_estimate=pl.CostEstimate(
            flops=flops, transcendentals=0, bytes_accessed=bytes_acc),
    )(*args)


# ----------------------------------------------------------------------------
# Tiny plain-JAX epilogue on the reduced stats: per-channel BN scale / shift
# (training-mode biased variance).  Removes per-tile rsqrt from pass 2.
# ----------------------------------------------------------------------------
def bn_scale_shift(stats, gamma, beta, m, eps):
    ch_sum = jnp.sum(stats[:, 0, :], axis=0)
    ch_ssq = jnp.sum(stats[:, 1, :], axis=0)
    mean = ch_sum / m
    var = jnp.maximum(ch_ssq / m - mean * mean, 0.0)
    scale = gamma * lax.rsqrt(var + eps)
    shift = beta - mean * scale
    return scale.reshape(1, -1), shift.reshape(1, -1)


# ----------------------------------------------------------------------------
# Pass 2: y * scale + shift (+ ReLU) (+ fused residual: raw, or BN-normalized
# shortcut).  Pure streaming pass, grid axis "parallel".
# ----------------------------------------------------------------------------
def _make_pass2_kernel(relu, mode):
    def normalize(y_ref, sc_ref, sh_ref):
        out = y_ref[...].astype(jnp.float32) * sc_ref[...] + sh_ref[...]
        if relu:
            out = jnp.maximum(out, 0.0)
        return out

    if mode == "none":
        def kernel(y_ref, sc_ref, sh_ref, o_ref):
            o_ref[...] = normalize(y_ref, sc_ref, sh_ref).astype(o_ref.dtype)
    elif mode == "raw":
        def kernel(y_ref, sc_ref, sh_ref, r_ref, o_ref):
            out = normalize(y_ref, sc_ref, sh_ref) + r_ref[...].astype(jnp.float32)
            o_ref[...] = out.astype(o_ref.dtype)
    else:  # "bn": residual branch gets its own BatchNorm before the add
        def kernel(y_ref, sc_ref, sh_ref, r_ref, rsc_ref, rsh_ref, o_ref):
            out = (normalize(y_ref, sc_ref, sh_ref)
                   + r_ref[...].astype(jnp.float32) * rsc_ref[...] + rsh_ref[...])
            o_ref[...] = out.astype(o_ref.dtype)
    return kernel


def bn_apply(y, scale, shift, *, relu, tile_m, vmem_limit, out_dtype,
             residual=None, res_scale=None, res_shift=None):
    m_pad, c_pad = y.shape
    grid = (m_pad // tile_m,)
    args = [y, scale, shift]
    in_specs = [
        pl.BlockSpec((tile_m, c_pad), lambda i: (i, 0)),
        pl.BlockSpec((1, c_pad), lambda i: (0, 0)),            # resident
        pl.BlockSpec((1, c_pad), lambda i: (0, 0)),            # resident
    ]
    mode = "none"
    res_bytes = 0
    if residual is not None:
        args.append(residual)
        in_specs.append(pl.BlockSpec((tile_m, c_pad), lambda i: (i, 0)))
        res_bytes = m_pad * c_pad * residual.dtype.itemsize
        if res_scale is not None:
            mode = "bn"
            args += [res_scale, res_shift]
            in_specs += [pl.BlockSpec((1, c_pad), lambda i: (0, 0)),
                         pl.BlockSpec((1, c_pad), lambda i: (0, 0))]
        else:
            mode = "raw"

    bytes_acc = (m_pad * c_pad * (y.dtype.itemsize
                                  + jnp.dtype(out_dtype).itemsize)
                 + res_bytes + 4 * c_pad * 4)
    return pl.pallas_call(
        _make_pass2_kernel(relu, mode),
        grid_spec=pltpu.PrefetchScalarGridSpec(
            num_scalar_prefetch=0, grid=grid,
            in_specs=in_specs,
            out_specs=pl.BlockSpec((tile_m, c_pad), lambda i: (i, 0))),
        out_shape=jax.ShapeDtypeStruct((m_pad, c_pad), out_dtype),
        compiler_params=pltpu.CompilerParams(
            dimension_semantics=("parallel",),
            vmem_limit_bytes=vmem_limit),
        cost_estimate=pl.CostEstimate(
            flops=6 * m_pad * c_pad, transcendentals=0,
            bytes_accessed=bytes_acc),
    )(*args)


# ----------------------------------------------------------------------------
# JAX glue: im2col patch extraction (gather/reshape only; matmuls in-kernel).
# ----------------------------------------------------------------------------
def im2col_3x3(x_nhwc, stride, pad=1):
    B, H, W, C = x_nhwc.shape
    xp = jnp.pad(x_nhwc, ((0, 0), (pad, pad), (pad, pad), (0, 0)))
    Ho = (H + 2 * pad - 3) // stride + 1
    Wo = (W + 2 * pad - 3) // stride + 1
    cols = []
    for ky in range(3):
        for kx in range(3):
            cols.append(xp[:,
                           ky:ky + (Ho - 1) * stride + 1:stride,
                           kx:kx + (Wo - 1) * stride + 1:stride, :])
    patches = jnp.concatenate(cols, axis=-1)          # (B, Ho, Wo, 9*C)
    return patches.reshape(B * Ho * Wo, 9 * C), (Ho, Wo)


# ----------------------------------------------------------------------------
# FracBlk forward
# ----------------------------------------------------------------------------
def frac_blk_forward(x_nchw, params, *, stride, eps=1e-5):
    tile_cap, vmem_limit = _chip_config()
    x = jnp.transpose(x_nchw, (0, 2, 3, 1)).astype(jnp.float32)   # NHWC
    B, H, W, cin = x.shape
    cout = params["w1"].shape[0]
    c_pad = _round_up(cout, _LANE)

    def vec(name):                                    # (C,) -> (c_pad,) f32
        return _pad_to(params[name].reshape(-1).astype(jnp.float32), (c_pad,))

    # ---- conv1 (3x3, stride, pad=1) -> bn1 -> relu --------------------------
    # Conv biases are dropped: a per-channel constant added before
    # training-mode BN cancels exactly in the normalized output.
    p1, (ho, wo) = im2col_3x3(x, stride)
    m = B * ho * wo
    tile_m = _choose_tile_m(m, tile_cap)
    m_pad = _round_up(m, tile_m)
    k1_pad = _round_up(9 * cin, _LANE)
    p1 = _pad_to(p1, (m_pad, k1_pad)).astype(jnp.bfloat16)
    w1 = params["w1"].transpose(2, 3, 1, 0).reshape(9 * cin, cout)
    w1 = _pad_to(w1, (k1_pad, c_pad)).astype(jnp.bfloat16)

    y1, st1 = matmul_stats(p1, w1, tile_m=tile_m, vmem_limit=vmem_limit)
    sc1, sh1 = bn_scale_shift(st1, vec("g1"), vec("bt1"), m, eps)
    h = bn_apply(y1, sc1, sh1, relu=True, tile_m=tile_m,
                 vmem_limit=vmem_limit, out_dtype=jnp.bfloat16)

    # ---- conv2 (3x3, stride=1, pad=1) -> bn2 --------------------------------
    # Slice back to the REAL channel count before im2col so K2 stays small.
    h_img = h[:m].reshape(B, ho, wo, c_pad)[:, :, :, :cout]
    p2, _ = im2col_3x3(h_img, 1)                      # (m, 9*cout) bf16
    k2_pad = _round_up(9 * cout, _LANE)
    p2 = _pad_to(p2, (m_pad, k2_pad))
    w2 = params["w2"].transpose(2, 3, 1, 0).reshape(9 * cout, cout)
    w2 = _pad_to(w2, (k2_pad, c_pad)).astype(jnp.bfloat16)

    if cin != cout:
        # Fused 1x1-conv + BN shortcut: one matmul pass (both branches, both
        # stat pairs) + one normalize pass (both BNs + add).
        xs = x[:, ::stride, ::stride, :].reshape(m, cin)
        kin_pad = _round_up(cin, _LANE)
        xs = _pad_to(xs, (m_pad, kin_pad)).astype(jnp.bfloat16)
        we = params["we"][:, :, 0, 0].T               # (cin, cout)
        we = _pad_to(we, (kin_pad, c_pad)).astype(jnp.bfloat16)

        y2, st2, ye, ste = matmul_stats(p2, w2, tile_m=tile_m,
                                        vmem_limit=vmem_limit,
                                        shortcut=(xs, we))
        sc2, sh2 = bn_scale_shift(st2, vec("g2"), vec("bt2"), m, eps)
        sce, she = bn_scale_shift(ste, vec("ge"), vec("bte"), m, eps)
        out = bn_apply(y2, sc2, sh2, relu=False, tile_m=tile_m,
                       vmem_limit=vmem_limit, out_dtype=jnp.float32,
                       residual=ye, res_scale=sce, res_shift=she)
    else:
        # Identity shortcut, fused as a raw residual into conv2's BN pass.
        # TODO(synk): with stride > 1 and cin == cout PyTorch's identity
        # shortcut has mismatched shapes (the module would raise); the strided
        # slice here is only for shape-compatible completeness.
        xs = x[:, ::stride, ::stride, :].reshape(m, cout)
        xs = _pad_to(xs, (m_pad, c_pad)).astype(jnp.bfloat16)
        y2, st2 = matmul_stats(p2, w2, tile_m=tile_m, vmem_limit=vmem_limit)
        sc2, sh2 = bn_scale_shift(st2, vec("g2"), vec("bt2"), m, eps)
        out = bn_apply(y2, sc2, sh2, relu=False, tile_m=tile_m,
                       vmem_limit=vmem_limit, out_dtype=jnp.float32,
                       residual=xs)

    out = out[:m].reshape(B, ho, wo, c_pad)[:, :, :, :cout]
    return jnp.transpose(out, (0, 3, 1, 2))                       # NCHW


# ----------------------------------------------------------------------------
# Pure-JAX f32 reference (matches PyTorch forward, including conv biases)
# ----------------------------------------------------------------------------
def ref_forward(x_nchw, params, stride, eps=1e-5):
    def conv(x, w, b, s, pad):
        y = jax.lax.conv_general_dilated(
            x, w, (s, s), [(pad, pad), (pad, pad)],
            dimension_numbers=("NCHW", "OIHW", "NCHW"))
        return y + b[None, :, None, None]

    def bn(x, g, bt):
        mean = jnp.mean(x, axis=(0, 2, 3), keepdims=True)
        var = jnp.mean((x - mean) ** 2, axis=(0, 2, 3), keepdims=True)
        return ((x - mean) * jax.lax.rsqrt(var + eps) * g[None, :, None, None]
                + bt[None, :, None, None])

    out = jax.nn.relu(bn(conv(x_nchw, params["w1"], params["b1"], stride, 1),
                         params["g1"], params["bt1"]))
    out = bn(conv(out, params["w2"], params["b2"], 1, 1),
             params["g2"], params["bt2"])
    if "we" in params:
        sc = bn(conv(x_nchw, params["we"], params["be"], stride, 0),
                params["ge"], params["bte"])
    else:
        sc = x_nchw
    return sc + out


if __name__ == "__main__":
    normal = jax.random.normal
    ks = jax.random.split(jax.random.PRNGKey(0), 24)
    B, H, W = 2, 16, 16

    # ---- case 1: ch_in != ch_out (fused 1x1-conv + BN shortcut), stride 2 --
    ch_in, ch_out, stride = 4, 8, 2
    params = dict(
        w1=0.1 * normal(ks[1], (ch_out, ch_in, 3, 3), jnp.float32),
        b1=0.05 * normal(ks[2], (ch_out,), jnp.float32),
        g1=1.0 + 0.1 * normal(ks[3], (ch_out,), jnp.float32),
        bt1=0.1 * normal(ks[4], (ch_out,), jnp.float32),
        w2=0.1 * normal(ks[5], (ch_out, ch_out, 3, 3), jnp.float32),
        b2=0.05 * normal(ks[6], (ch_out,), jnp.float32),
        g2=1.0 + 0.1 * normal(ks[7], (ch_out,), jnp.float32),
        bt2=0.1 * normal(ks[8], (ch_out,), jnp.float32),
        we=0.1 * normal(ks[9], (ch_out, ch_in, 1, 1), jnp.float32),
        be=0.05 * normal(ks[10], (ch_out,), jnp.float32),
        ge=1.0 + 0.1 * normal(ks[11], (ch_out,), jnp.float32),
        bte=0.1 * normal(ks[12], (ch_out,), jnp.float32),
    )
    x = normal(ks[0], (B, ch_in, H, W), jnp.float32)

    fwd = jax.jit(functools.partial(frac_blk_forward, stride=stride))
    out = jax.block_until_ready(fwd(x, params))
    assert out.shape == (B, ch_out, H // stride, W // stride), out.shape
    ref = ref_forward(x, params, stride)
    err = float(jnp.max(jnp.abs(out - ref)))
    # bf16 MXU operands + bf16 intermediates with f32 stats: ~1e-2-scale dev.
    assert err < 1e-1, f"case1 max abs error {err}"

    # ---- case 2: ch_in == ch_out (identity shortcut fused as residual) -----
    ch, stride2 = 8, 1
    params2 = dict(
        w1=0.1 * normal(ks[14], (ch, ch, 3, 3), jnp.float32),
        b1=0.05 * normal(ks[15], (ch,), jnp.float32),
        g1=1.0 + 0.1 * normal(ks[16], (ch,), jnp.float32),
        bt1=0.1 * normal(ks[17], (ch,), jnp.float32),
        w2=0.1 * normal(ks[18], (ch, ch, 3, 3), jnp.float32),
        b2=0.05 * normal(ks[19], (ch,), jnp.float32),
        g2=1.0 + 0.1 * normal(ks[20], (ch,), jnp.float32),
        bt2=0.1 * normal(ks[21], (ch,), jnp.float32),
    )
    x2 = normal(ks[13], (B, ch, H, W), jnp.float32)
    fwd2 = jax.jit(functools.partial(frac_blk_forward, stride=stride2))
    out2 = jax.block_until_ready(fwd2(x2, params2))
    assert out2.shape == (B, ch, H, W), out2.shape
    ref2 = ref_forward(x2, params2, stride2)
    err2 = float(jnp.max(jnp.abs(out2 - ref2)))
    assert err2 < 1e-1, f"case2 max abs error {err2}"

    print("KERNEL_OK")
</pallas_src>

<mosaic_0001>
module attributes {stable_mosaic.version = 11 : i64} {
  func.func @_pass1_kernel_single(%arg0: i32, %arg1: memref<128x128xbf16, #tpu.memory_space<vmem>>, %arg2: memref<128x128xbf16, #tpu.memory_space<vmem>>, %arg3: memref<128x128xbf16, #tpu.memory_space<vmem>>, %arg4: memref<1x8x128xf32, #tpu.memory_space<vmem>>) attributes {dimension_semantics = [#tpu.dimension_semantics<parallel>], iteration_bounds = array<i64: 1>, scalar_prefetch = 0 : i64, scratch_operands = 0 : i64, tpu.core_type = #tpu.core_type<tc>, window_params = [{transform_indices = @transform_0, window_bounds = array<i64: 128, 128>}, {pipeline_mode = #tpu.pipeline_mode<synchronous>, transform_indices = @transform_1, window_bounds = array<i64: 128, 128>}, {transform_indices = @transform_2, window_bounds = array<i64: 128, 128>}, {transform_indices = @transform_3, window_bounds = array<i64: 1, 8, 128>}]} {
    %c0 = arith.constant 0 : index
    %c0_0 = arith.constant 0 : index
    %0 = vector.load %arg1[%c0, %c0_0] : memref<128x128xbf16, #tpu.memory_space<vmem>>, vector<128x128xbf16>
    %c0_1 = arith.constant 0 : index
    %c0_2 = arith.constant 0 : index
    %1 = vector.load %arg2[%c0_1, %c0_2] : memref<128x128xbf16, #tpu.memory_space<vmem>>, vector<128x128xbf16>
    %cst = arith.constant dense<0.000000e+00> : vector<128x128xf32>
    %2 = tpu.matmul %0, %1, %cst {dimension_numbers = #tpu.dot_dimension_numbers<[1], [0], [0], [1], [0, 0, 1, 1], [], []>} : vector<128x128xbf16>, vector<128x128xbf16>, vector<128x128xf32> -> vector<128x128xf32>
    %3 = arith.truncf %2 : vector<128x128xf32> to vector<128x128xbf16>
    %c0_3 = arith.constant 0 : index
    %c0_4 = arith.constant 0 : index
    %4 = vector.load %arg3[%c0_3, %c0_4] : memref<128x128xbf16, #tpu.memory_space<vmem>>, vector<128x128xbf16>
    tpu.vector_store %arg3[%c0_3, %c0_4], %3 {strides = array<i32>} : memref<128x128xbf16, #tpu.memory_space<vmem>>, vector<128x128xbf16>,
    %cst_5 = arith.constant dense<0.000000e+00> : vector<128xf32>
    %5 = vector.multi_reduction <add>, %2, %cst_5 [0] : vector<128x128xf32> to vector<128xf32>
    %6 = vector.shape_cast %5 : vector<128xf32> to vector<1x128xf32>
    %7 = arith.mulf %2, %2 : vector<128x128xf32>
    %cst_6 = arith.constant dense<0.000000e+00> : vector<128xf32>
    %8 = vector.multi_reduction <add>, %7, %cst_6 [0] : vector<128x128xf32> to vector<128xf32>
    %9 = vector.shape_cast %8 : vector<128xf32> to vector<1x128xf32>
    %cst_7 = arith.constant 0.000000e+00 : f32
    %10 = vector.broadcast %cst_7 : f32 to vector<6x128xf32>
    %11 = tpu.concatenate %6, %9, %10 in 0 : vector<1x128xf32>, vector<1x128xf32>, vector<6x128xf32> -> vector<8x128xf32>
    %12 = vector.shape_cast %11 : vector<8x128xf32> to vector<1x8x128xf32>
    %c0_8 = arith.constant 0 : index
    %c0_9 = arith.constant 0 : index
    %c0_10 = arith.constant 0 : index
    %13 = vector.load %arg4[%c0_8, %c0_9, %c0_10] : memref<1x8x128xf32, #tpu.memory_space<vmem>>, vector<1x8x128xf32>
    tpu.vector_store %arg4[%c0_8, %c0_9, %c0_10], %12 {strides = array<i32>} : memref<1x8x128xf32, #tpu.memory_space<vmem>>, vector<1x8x128xf32>,
    return
  }
  func.func @transform_0(%arg0: i32) -> (i32, i32) {
    %c0_i32 = arith.constant 0 : i32
    %c0_i32_0 = arith.constant 0 : i32
    return %arg0, %c0_i32 : i32, i32
  }
  func.func @transform_1(%arg0: i32) -> (i32, i32) {
    %c0_i32 = arith.constant 0 : i32
    %c0_i32_0 = arith.constant 0 : i32
    %c0_i32_1 = arith.constant 0 : i32
    return %c0_i32, %c0_i32_0 : i32, i32
  }
  func.func @transform_2(%arg0: i32) -> (i32, i32) {
    %c0_i32 = arith.constant 0 : i32
    %c0_i32_0 = arith.constant 0 : i32
    return %arg0, %c0_i32 : i32, i32
  }
  func.func @transform_3(%arg0: i32) -> (i32, i32, i32) {
    %c0_i32 = arith.constant 0 : i32
    %c0_i32_0 = arith.constant 0 : i32
    %c0_i32_1 = arith.constant 0 : i32
    return %arg0, %c0_i32, %c0_i32_0 : i32, i32, i32
  }
}

module attributes {stable_mosaic.version = 11 : i64} {
  func.func @kernel(%arg0: i32, %arg1: memref<128x128xbf16, #tpu.memory_space<vmem>>, %arg2: memref<1x128xf32, #tpu.memory_space<vmem>>, %arg3: memref<1x128xf32, #tpu.memory_space<vmem>>, %arg4: memref<128x128xbf16, #tpu.memory_space<vmem>>) attributes {dimension_semantics = [#tpu.dimension_semantics<parallel>], iteration_bounds = array<i64: 1>, scalar_prefetch = 0 : i64, scratch_operands = 0 : i64, tpu.core_type = #tpu.core_type<tc>, window_params = [{transform_indices = @transform_0, window_bounds = array<i64: 128, 128>}, {pipeline_mode = #tpu.pipeline_mode<synchronous>, transform_indices = @transform_1, window_bounds = array<i64: 1, 128>}, {pipeline_mode = #tpu.pipeline_mode<synchronous>, transform_indices = @transform_2, window_bounds = array<i64: 1, 128>}, {transform_indices = @transform_3, window_bounds = array<i64: 128, 128>}]} {
    %c0 = arith.constant 0 : index
    %c0_0 = arith.constant 0 : index
    %0 = vector.load %arg1[%c0, %c0_0] : memref<128x128xbf16, #tpu.memory_space<vmem>>, vector<128x128xbf16>
    %1 = arith.extf %0 : vector<128x128xbf16> to vector<128x128xf32>
    %c0_1 = arith.constant 0 : index
    %c0_2 = arith.constant 0 : index
    %2 = vector.load %arg2[%c0_1, %c0_2] : memref<1x128xf32, #tpu.memory_space<vmem>>, vector<1x128xf32>
    %3 = vector.broadcast %2 : vector<1x128xf32> to vector<128x128xf32>
    %4 = arith.mulf %1, %3 : vector<128x128xf32>
    %c0_3 = arith.constant 0 : index
    %c0_4 = arith.constant 0 : index
    %5 = vector.load %arg3[%c0_3, %c0_4] : memref<1x128xf32, #tpu.memory_space<vmem>>, vector<1x128xf32>
    %6 = vector.broadcast %5 : vector<1x128xf32> to vector<128x128xf32>
    %7 = arith.addf %4, %6 : vector<128x128xf32>
    %cst = arith.constant 0.000000e+00 : f32
    %8 = vector.broadcast %cst : f32 to vector<128x128xf32>
    %9 = arith.maximumf %7, %8 : vector<128x128xf32>
    %10 = arith.truncf %9 : vector<128x128xf32> to vector<128x128xbf16>
    %c0_5 = arith.constant 0 : index
    %c0_6 = arith.constant 0 : index
    %11 = vector.load %arg4[%c0_5, %c0_6] : memref<128x128xbf16, #tpu.memory_space<vmem>>, vector<128x128xbf16>
    tpu.vector_store %arg4[%c0_5, %c0_6], %10 {strides = array<i32>} : memref<128x128xbf16, #tpu.memory_space<vmem>>, vector<128x128xbf16>,
    return
  }
  func.func @transform_0(%arg0: i32) -> (i32, i32) {
    %c0_i32 = arith.constant 0 : i32
    %c0_i32_0 = arith.constant 0 : i32
    return %arg0, %c0_i32 : i32, i32
  }
  func.func @transform_1(%arg0: i32) -> (i32, i32) {
    %c0_i32 = arith.constant 0 : i32
    %c0_i32_0 = arith.constant 0 : i32
    %c0_i32_1 = arith.constant 0 : i32
    return %c0_i32, %c0_i32_0 : i32, i32
  }
  func.func @transform_2(%arg0: i32) -> (i32, i32) {
    %c0_i32 = arith.constant 0 : i32
    %c0_i32_0 = arith.constant 0 : i32
    %c0_i32_1 = arith.constant 0 : i32
    return %c0_i32, %c0_i32_0 : i32, i32
  }
  func.func @transform_3(%arg0: i32) -> (i32, i32) {
    %c0_i32 = arith.constant 0 : i32
    %c0_i32_0 = arith.constant 0 : i32
    return %arg0, %c0_i32 : i32, i32
  }
}

module attributes {stable_mosaic.version = 11 : i64} {
  func.func @kernel(%arg0: i32, %arg1: memref<128x128xbf16, #tpu.memory_space<vmem>>, %arg2: memref<1x128xf32, #tpu.memory_space<vmem>>, %arg3: memref<1x128xf32, #tpu.memory_space<vmem>>, %arg4: memref<128x128xbf16, #tpu.memory_space<vmem>>, %arg5: memref<1x128xf32, #tpu.memory_space<vmem>>, %arg6: memref<1x128xf32, #tpu.memory_space<vmem>>, %arg7: memref<128x128xf32, #tpu.memory_space<vmem>>) attributes {dimension_semantics = [#tpu.dimension_semantics<parallel>], iteration_bounds = array<i64: 1>, scalar_prefetch = 0 : i64, scratch_operands = 0 : i64, tpu.core_type = #tpu.core_type<tc>, window_params = [{transform_indices = @transform_0, window_bounds = array<i64: 128, 128>}, {pipeline_mode = #tpu.pipeline_mode<synchronous>, transform_indices = @transform_1, window_bounds = array<i64: 1, 128>}, {pipeline_mode = #tpu.pipeline_mode<synchronous>, transform_indices = @transform_2, window_bounds = array<i64: 1, 128>}, {transform_indices = @transform_3, window_bounds = array<i64: 128, 128>}, {pipeline_mode = #tpu.pipeline_mode<synchronous>, transform_indices = @transform_4, window_bounds = array<i64: 1, 128>}, {pipeline_mode = #tpu.pipeline_mode<synchronous>, transform_indices = @transform_5, window_bounds = array<i64: 1, 128>}, {transform_indices = @transform_6, window_bounds = array<i64: 128, 128>}]} {
    %c0 = arith.constant 0 : index
    %c0_0 = arith.constant 0 : index
    %0 = vector.load %arg1[%c0, %c0_0] : memref<128x128xbf16, #tpu.memory_space<vmem>>, vector<128x128xbf16>
    %1 = arith.extf %0 : vector<128x128xbf16> to vector<128x128xf32>
    %c0_1 = arith.constant 0 : index
    %c0_2 = arith.constant 0 : index
    %2 = vector.load %arg2[%c0_1, %c0_2] : memref<1x128xf32, #tpu.memory_space<vmem>>, vector<1x128xf32>
    %3 = vector.broadcast %2 : vector<1x128xf32> to vector<128x128xf32>
    %4 = arith.mulf %1, %3 : vector<128x128xf32>
    %c0_3 = arith.constant 0 : index
    %c0_4 = arith.constant 0 : index
    %5 = vector.load %arg3[%c0_3, %c0_4] : memref<1x128xf32, #tpu.memory_space<vmem>>, vector<1x128xf32>
    %6 = vector.broadcast %5 : vector<1x128xf32> to vector<128x128xf32>
    %7 = arith.addf %4, %6 : vector<128x128xf32>
    %c0_5 = arith.constant 0 : index
    %c0_6 = arith.constant 0 : index
    %8 = vector.load %arg4[%c0_5, %c0_6] : memref<128x128xbf16, #tpu.memory_space<vmem>>, vector<128x128xbf16>
    %9 = arith.extf %8 : vector<128x128xbf16> to vector<128x128xf32>
    %c0_7 = arith.constant 0 : index
    %c0_8 = arith.constant 0 : index
    %10 = vector.load %arg5[%c0_7, %c0_8] : memref<1x128xf32, #tpu.memory_space<vmem>>, vector<1x128xf32>
    %11 = vector.broadcast %10 : vector<1x128xf32> to vector<128x128xf32>
    %12 = arith.mulf %9, %11 : vector<128x128xf32>
    %13 = arith.addf %7, %12 : vector<128x128xf32>
    %c0_9 = arith.constant 0 : index
    %c0_10 = arith.constant 0 : index
    %14 = vector.load %arg6[%c0_9, %c0_10] : memref<1x128xf32, #tpu.memory_space<vmem>>, vector<1x128xf32>
    %15 = vector.broadcast %14 : vector<1x128xf32> to vector<128x128xf32>
    %16 = arith.addf %13, %15 : vector<128x128xf32>
    %c0_11 = arith.constant 0 : index
    %c0_12 = arith.constant 0 : index
    %17 = vector.load %arg7[%c0_11, %c0_12] : memref<128x128xf32, #tpu.memory_space<vmem>>, vector<128x128xf32>
    tpu.vector_store %arg7[%c0_11, %c0_12], %16 {strides = array<i32>} : memref<128x128xf32, #tpu.memory_space<vmem>>, vector<128x128xf32>,
    return
  }
  func.func @transform_0(%arg0: i32) -> (i32, i32) {
    %c0_i32 = arith.constant 0 : i32
    %c0_i32_0 = arith.constant 0 : i32
    return %arg0, %c0_i32 : i32, i32
  }
  func.func @transform_1(%arg0: i32) -> (i32, i32) {
    %c0_i32 = arith.constant 0 : i32
    %c0_i32_0 = arith.constant 0 : i32
    %c0_i32_1 = arith.constant 0 : i32
    return %c0_i32, %c0_i32_0 : i32, i32
  }
  func.func @transform_2(%arg0: i32) -> (i32, i32) {
    %c0_i32 = arith.constant 0 : i32
    %c0_i32_0 = arith.constant 0 : i32
    %c0_i32_1 = arith.constant 0 : i32
    return %c0_i32, %c0_i32_0 : i32, i32
  }
  func.func @transform_3(%arg0: i32) -> (i32, i32) {
    %c0_i32 = arith.constant 0 : i32
    %c0_i32_0 = arith.constant 0 : i32
    return %arg0, %c0_i32 : i32, i32
  }
  func.func @transform_4(%arg0: i32) -> (i32, i32) {
    %c0_i32 = arith.constant 0 : i32
    %c0_i32_0 = arith.constant 0 : i32
    %c0_i32_1 = arith.constant 0 : i32
    return %c0_i32, %c0_i32_0 : i32, i32
  }
  func.func @transform_5(%arg0: i32) -> (i32, i32) {
    %c0_i32 = arith.constant 0 : i32
    %c0_i32_0 = arith.constant 0 : i32
    %c0_i32_1 = arith.constant 0 : i32
    return %c0_i32, %c0_i32_0 : i32, i32
  }
  func.func @transform_6(%arg0: i32) -> (i32, i32) {
    %c0_i32 = arith.constant 0 : i32
    %c0_i32_0 = arith.constant 0 : i32
    return %arg0, %c0_i32 : i32, i32
  }
}

module attributes {stable_mosaic.version = 11 : i64} {
  func.func @_pass1_kernel_fused(%arg0: i32, %arg1: memref<128x128xbf16, #tpu.memory_space<vmem>>, %arg2: memref<128x128xbf16, #tpu.memory_space<vmem>>, %arg3: memref<128x128xbf16, #tpu.memory_space<vmem>>, %arg4: memref<128x128xbf16, #tpu.memory_space<vmem>>, %arg5: memref<128x128xbf16, #tpu.memory_space<vmem>>, %arg6: memref<1x8x128xf32, #tpu.memory_space<vmem>>, %arg7: memref<128x128xbf16, #tpu.memory_space<vmem>>, %arg8: memref<1x8x128xf32, #tpu.memory_space<vmem>>) attributes {dimension_semantics = [#tpu.dimension_semantics<parallel>], iteration_bounds = array<i64: 1>, scalar_prefetch = 0 : i64, scratch_operands = 0 : i64, tpu.core_type = #tpu.core_type<tc>, window_params = [{transform_indices = @transform_0, window_bounds = array<i64: 128, 128>}, {pipeline_mode = #tpu.pipeline_mode<synchronous>, transform_indices = @transform_1, window_bounds = array<i64: 128, 128>}, {transform_indices = @transform_2, window_bounds = array<i64: 128, 128>}, {pipeline_mode = #tpu.pipeline_mode<synchronous>, transform_indices = @transform_3, window_bounds = array<i64: 128, 128>}, {transform_indices = @transform_4, window_bounds = array<i64: 128, 128>}, {transform_indices = @transform_5, window_bounds = array<i64: 1, 8, 128>}, {transform_indices = @transform_6, window_bounds = array<i64: 128, 128>}, {transform_indices = @transform_7, window_bounds = array<i64: 1, 8, 128>}]} {
    %c0 = arith.constant 0 : index
    %c0_0 = arith.constant 0 : index
    %0 = vector.load %arg1[%c0, %c0_0] : memref<128x128xbf16, #tpu.memory_space<vmem>>, vector<128x128xbf16>
    %c0_1 = arith.constant 0 : index
    %c0_2 = arith.constant 0 : index
    %1 = vector.load %arg2[%c0_1, %c0_2] : memref<128x128xbf16, #tpu.memory_space<vmem>>, vector<128x128xbf16>
    %cst = arith.constant dense<0.000000e+00> : vector<128x128xf32>
    %2 = tpu.matmul %0, %1, %cst {dimension_numbers = #tpu.dot_dimension_numbers<[1], [0], [0], [1], [0, 0, 1, 1], [], []>} : vector<128x128xbf16>, vector<128x128xbf16>, vector<128x128xf32> -> vector<128x128xf32>
    %3 = arith.truncf %2 : vector<128x128xf32> to vector<128x128xbf16>
    %c0_3 = arith.constant 0 : index
    %c0_4 = arith.constant 0 : index
    %4 = vector.load %arg5[%c0_3, %c0_4] : memref<128x128xbf16, #tpu.memory_space<vmem>>, vector<128x128xbf16>
    tpu.vector_store %arg5[%c0_3, %c0_4], %3 {strides = array<i32>} : memref<128x128xbf16, #tpu.memory_space<vmem>>, vector<128x128xbf16>,
    %cst_5 = arith.constant dense<0.000000e+00> : vector<128xf32>
    %5 = vector.multi_reduction <add>, %2, %cst_5 [0] : vector<128x128xf32> to vector<128xf32>
    %6 = vector.shape_cast %5 : vector<128xf32> to vector<1x128xf32>
    %7 = arith.mulf %2, %2 : vector<128x128xf32>
    %cst_6 = arith.constant dense<0.000000e+00> : vector<128xf32>
    %8 = vector.multi_reduction <add>, %7, %cst_6 [0] : vector<128x128xf32> to vector<128xf32>
    %9 = vector.shape_cast %8 : vector<128xf32> to vector<1x128xf32>
    %cst_7 = arith.constant 0.000000e+00 : f32
    %10 = vector.broadcast %cst_7 : f32 to vector<6x128xf32>
    %11 = tpu.concatenate %6, %9, %10 in 0 : vector<1x128xf32>, vector<1x128xf32>, vector<6x128xf32> -> vector<8x128xf32>
    %12 = vector.shape_cast %11 : vector<8x128xf32> to vector<1x8x128xf32>
    %c0_8 = arith.constant 0 : index
    %c0_9 = arith.constant 0 : index
    %c0_10 = arith.constant 0 : index
    %13 = vector.load %arg6[%c0_8, %c0_9, %c0_10] : memref<1x8x128xf32, #tpu.memory_space<vmem>>, vector<1x8x128xf32>
    tpu.vector_store %arg6[%c0_8, %c0_9, %c0_10], %12 {strides = array<i32>} : memref<1x8x128xf32, #tpu.memory_space<vmem>>, vector<1x8x128xf32>,
    %c0_11 = arith.constant 0 : index
    %c0_12 = arith.constant 0 : index
    %14 = vector.load %arg3[%c0_11, %c0_12] : memref<128x128xbf16, #tpu.memory_space<vmem>>, vector<128x128xbf16>
    %c0_13 = arith.constant 0 : index
    %c0_14 = arith.constant 0 : index
    %15 = vector.load %arg4[%c0_13, %c0_14] : memref<128x128xbf16, #tpu.memory_space<vmem>>, vector<128x128xbf16>
    %cst_15 = arith.constant dense<0.000000e+00> : vector<128x128xf32>
    %16 = tpu.matmul %14, %15, %cst_15 {dimension_numbers = #tpu.dot_dimension_numbers<[1], [0], [0], [1], [0, 0, 1, 1], [], []>} : vector<128x128xbf16>, vector<128x128xbf16>, vector<128x128xf32> -> vector<128x128xf32>
    %17 = arith.truncf %16 : vector<128x128xf32> to vector<128x128xbf16>
    %c0_16 = arith.constant 0 : index
    %c0_17 = arith.constant 0 : index
    %18 = vector.load %arg7[%c0_16, %c0_17] : memref<128x128xbf16, #tpu.memory_space<vmem>>, vector<128x128xbf16>
    tpu.vector_store %arg7[%c0_16, %c0_17], %17 {strides = array<i32>} : memref<128x128xbf16, #tpu.memory_space<vmem>>, vector<128x128xbf16>,
    %cst_18 = arith.constant dense<0.000000e+00> : vector<128xf32>
    %19 = vector.multi_reduction <add>, %16, %cst_18 [0] : vector<128x128xf32> to vector<128xf32>
    %20 = vector.shape_cast %19 : vector<128xf32> to vector<1x128xf32>
    %21 = arith.mulf %16, %16 : vector<128x128xf32>
    %cst_19 = arith.constant dense<0.000000e+00> : vector<128xf32>
    %22 = vector.multi_reduction <add>, %21, %cst_19 [0] : vector<128x128xf32> to vector<128xf32>
    %23 = vector.shape_cast %22 : vector<128xf32> to vector<1x128xf32>
    %cst_20 = arith.constant 0.000000e+00 : f32
    %24 = vector.broadcast %cst_20 : f32 to vector<6x128xf32>
    %25 = tpu.concatenate %20, %23, %24 in 0 : vector<1x128xf32>, vector<1x128xf32>, vector<6x128xf32> -> vector<8x128xf32>
    %26 = vector.shape_cast %25 : vector<8x128xf32> to vector<1x8x128xf32>
    %c0_21 = arith.constant 0 : index
    %c0_22 = arith.constant 0 : index
    %c0_23 = arith.constant 0 : index
    %27 = vector.load %arg8[%c0_21, %c0_22, %c0_23] : memref<1x8x128xf32, #tpu.memory_space<vmem>>, vector<1x8x128xf32>
    tpu.vector_store %arg8[%c0_21, %c0_22, %c0_23], %26 {strides = array<i32>} : memref<1x8x128xf32, #tpu.memory_space<vmem>>, vector<1x8x128xf32>,
    return
  }
  func.func @transform_0(%arg0: i32) -> (i32, i32) {
    %c0_i32 = arith.constant 0 : i32
    %c0_i32_0 = arith.constant 0 : i32
    return %arg0, %c0_i32 : i32, i32
  }
  func.func @transform_1(%arg0: i32) -> (i32, i32) {
    %c0_i32 = arith.constant 0 : i32
    %c0_i32_0 = arith.constant 0 : i32
    %c0_i32_1 = arith.constant 0 : i32
    return %c0_i32, %c0_i32_0 : i32, i32
  }
  func.func @transform_2(%arg0: i32) -> (i32, i32) {
    %c0_i32 = arith.constant 0 : i32
    %c0_i32_0 = arith.constant 0 : i32
    return %arg0, %c0_i32 : i32, i32
  }
  func.func @transform_3(%arg0: i32) -> (i32, i32) {
    %c0_i32 = arith.constant 0 : i32
    %c0_i32_0 = arith.constant 0 : i32
    %c0_i32_1 = arith.constant 0 : i32
    return %c0_i32, %c0_i32_0 : i32, i32
  }
  func.func @transform_4(%arg0: i32) -> (i32, i32) {
    %c0_i32 = arith.constant 0 : i32
    %c0_i32_0 = arith.constant 0 : i32
    return %arg0, %c0_i32 : i32, i32
  }
  func.func @transform_5(%arg0: i32) -> (i32, i32, i32) {
    %c0_i32 = arith.constant 0 : i32
    %c0_i32_0 = arith.constant 0 : i32
    %c0_i32_1 = arith.constant 0 : i32
    return %arg0, %c0_i32, %c0_i32_0 : i32, i32, i32
  }
  func.func @transform_6(%arg0: i32) -> (i32, i32) {
    %c0_i32 = arith.constant 0 : i32
    %c0_i32_0 = arith.constant 0 : i32
    return %arg0, %c0_i32 : i32, i32
  }
  func.func @transform_7(%arg0: i32) -> (i32, i32, i32) {
    %c0_i32 = arith.constant 0 : i32
    %c0_i32_0 = arith.constant 0 : i32
    %c0_i32_1 = arith.constant 0 : i32
    return %arg0, %c0_i32, %c0_i32_0 : i32, i32, i32
  }
}

</mosaic_0001>

<bundles_post_ra>
// kernel: frac_blk_forward.5
= control target key start
LH: loop header
LB: loop body
LE: loop exit
PB: predicated region body
PF: predicated region fallthrough
CT: control target
= control target key end

     0   :  { %s336_s0 = inlined_call_operand.vmem [shape: bf16[128,128], index: 0, kind: input, shape index: {}]   ;;  %s337_s1 = inlined_call_operand.vmem [shape: f32[1,128], index: 1, kind: input, shape index: {}]   ;;  %s338_s2 = inlined_call_operand.vmem [shape: f32[1,128], index: 2, kind: input, shape index: {}]   ;;  %s339_s3 = inlined_call_operand.vmem [shape: bf16[128,128], index: 3, kind: output, shape index: {}]  }
   0x1   :  { %v139_v0 = vld [vmem:[%s336_s0] sm:$0xff]   ;;  %v210_v5 = vld [vmem:[%s336_s0 + $0x8] sm:$0xff]   ;;  %v211_v8 = vld [vmem:[%s336_s0 + $0x10] sm:$0xff]  }
   0x2   :  { %v252_v1 = vld [vmem:[%s337_s1] ss:$0 sm:$0xff]  ;;  %v140_v2 = vunpack.c.l.bf16 %v139_v0  ;;  %v141_v3 = vunpack.c.h.bf16 %v139_v0  ;;  %v144_v6 = vunpack.c.l.bf16 %v210_v5  ;;  %v145_v7 = vunpack.c.h.bf16 %v210_v5  ;;  %v212_v9 = vld [vmem:[%s336_s0 + $0x18] sm:$0xff]   ;;  %v214_v35 = vld [vmem:[%s336_s0 + $0x28] sm:$0xff]  }
   0x3   :  { %v257_v4 = vld [vmem:[%s338_s2] ss:$0 sm:$0xff]  ;;  %v148_v12 = vunpack.c.l.bf16 %v211_v8  ;;  %v149_v13 = vunpack.c.h.bf16 %v211_v8  ;;  %v152_v16 = vunpack.c.l.bf16 %v212_v9  ;;  %v153_v17 = vunpack.c.h.bf16 %v212_v9  ;;  %v215_v40 = vld [vmem:[%s336_s0 + $0x30] sm:$0xff]   ;;  %v216_v45 = vld [vmem:[%s336_s0 + $0x38] sm:$0xff]  }
   0x4   :  { %v50_v10 = vmul.f32 %v252_v1, %v140_v2  ;;  %v51_v11 = vmul.f32 %v252_v1, %v141_v3  ;;  %v52_v14 = vmul.f32 %v252_v1, %v144_v6  ;;  %v53_v15 = vmul.f32 %v252_v1, %v145_v7  ;;  %v213_v26 = vld [vmem:[%s336_s0 + $0x20] sm:$0xff]  }
   0x5   :  { %v54_v20 = vmul.f32 %v252_v1, %v148_v12  ;;  %v55_v21 = vmul.f32 %v252_v1, %v149_v13  ;;  %v56_v24 = vmul.f32 %v252_v1, %v152_v16  ;;  %v57_v25 = vmul.f32 %v252_v1, %v153_v17 }
   0x6   :  { %v70_v18 = vadd.f32 %v257_v4, %v50_v10  ;;  %v71_v19 = vadd.f32 %v257_v4, %v51_v11  ;;  %v72_v22 = vadd.f32 %v257_v4, %v52_v14  ;;  %v73_v23 = vadd.f32 %v257_v4, %v53_v15 }
   0x7   :  { %v74_v29 = vadd.f32 %v257_v4, %v54_v20  ;;  %v75_v30 = vadd.f32 %v257_v4, %v55_v21  ;;  %v76_v33 = vadd.f32 %v257_v4, %v56_v24  ;;  %v77_v34 = vadd.f32 %v257_v4, %v57_v25 }
   0x8   :  { %v86_v27 = vmax.f32 %v70_v18, 0.0  ;;  %v87_v28 = vmax.f32 %v71_v19, 0.0  ;;  %v88_v31 = vmax.f32 %v72_v22, 0.0  ;;  %v89_v32 = vmax.f32 %v73_v23, 0.0 }
   0x9   :  { %v90_v37 = vmax.f32 %v74_v29, 0.0  ;;  %v91_v38 = vmax.f32 %v75_v30, 0.0  ;;  %v156_v39 = vunpack.c.l.bf16 %v213_v26  ;;  %v92_v42 = vmax.f32 %v76_v33, 0.0 }
   0xa   :  { %v173_v36 = vpack.c.bf16 %v87_v28, %v86_v27  ;;  %v178_v41 = vpack.c.bf16 %v89_v32, %v88_v31  ;;  %v93_v43 = vmax.f32 %v77_v34, 0.0  ;;  %v157_v44 = vunpack.c.h.bf16 %v213_v26 }
   0xb   :  { %v183_v46 = vpack.c.bf16 %v91_v38, %v90_v37  ;;  %v58_v47 = vmul.f32 %v252_v1, %v156_v39  ;;  %v160_v48 = vunpack.c.l.bf16 %v214_v35  ;;  %v161_v49 = vunpack.c.h.bf16 %v214_v35 }
   0xc   :  { %174 = vst [vmem:[%s339_s3] sm:$0xff] %v173_v36   ;;  %v188_v50 = vpack.c.bf16 %v93_v43, %v92_v42  ;;  %v59_v51 = vmul.f32 %v252_v1, %v157_v44  ;;  %v164_v52 = vunpack.c.l.bf16 %v215_v40  ;;  %v165_v53 = vunpack.c.h.bf16 %v215_v40 }
   0xd   :  { %217 = vst [vmem:[%s339_s3 + $0x8] sm:$0xff] %v178_v41   ;;  %v78_v54 = vadd.f32 %v257_v4, %v58_v47  ;;  %v60_v55 = vmul.f32 %v252_v1, %v160_v48  ;;  %v61_v56 = vmul.f32 %v252_v1, %v161_v49  ;;  %v168_v57 = vunpack.c.l.bf16 %v216_v45 }
   0xe   :  { %218 = vst [vmem:[%s339_s3 + $0x10] sm:$0xff] %v183_v46   ;;  %v79_v58 = vadd.f32 %v257_v4, %v59_v51  ;;  %v62_v59 = vmul.f32 %v252_v1, %v164_v52  ;;  %v63_v60 = vmul.f32 %v252_v1, %v165_v53  ;;  %v169_v61 = vunpack.c.h.bf16 %v216_v45 }
   0xf   :  { %219 = vst [vmem:[%s339_s3 + $0x18] sm:$0xff] %v188_v50   ;;  %v94_v62 = vmax.f32 %v78_v54, 0.0  ;;  %v80_v63 = vadd.f32 %v257_v4, %v60_v55  ;;  %v81_v0 = vadd.f32 %v257_v4, %v61_v56  ;;  %v64_v2 = vmul.f32 %v252_v1, %v168_v57 }
  0x10   :  { %v95_v3 = vmax.f32 %v79_v58, 0.0  ;;  %v82_v5 = vadd.f32 %v257_v4, %v62_v59  ;;  %v83_v6 = vadd.f32 %v257_v4, %v63_v60  ;;  %v65_v7 = vmul.f32 %v252_v1, %v169_v61 }
  0x11   :  { %v96_v8 = vmax.f32 %v80_v63, 0.0  ;;  %v97_v9 = vmax.f32 %v81_v0, 0.0  ;;  %v84_v10 = vadd.f32 %v257_v4, %v64_v2 }
  0x12   :  { %v193_v11 = vpack.c.bf16 %v95_v3, %v94_v62  ;;  %v98_v12 = vmax.f32 %v82_v5, 0.0  ;;  %v99_v13 = vmax.f32 %v83_v6, 0.0  ;;  %v85_v14 = vadd.f32 %v257_v4, %v65_v7 }
  0x13   :  { %v198_v15 = vpack.c.bf16 %v97_v9, %v96_v8  ;;  %v100_v16 = vmax.f32 %v84_v10, 0.0 }
  0x14   :  { %220 = vst [vmem:[%s339_s3 + $0x20] sm:$0xff] %v193_v11   ;;  %v203_v17 = vpack.c.bf16 %v99_v13, %v98_v12  ;;  %v101_v18 = vmax.f32 %v85_v14, 0.0 }
  0x15   :  { %221 = vst [vmem:[%s339_s3 + $0x28] sm:$0xff] %v198_v15  }
  0x16   :  { %222 = vst [vmem:[%s339_s3 + $0x30] sm:$0xff] %v203_v17   ;;  %v208_v1 = vpack.c.bf16 %v101_v18, %v100_v16 }
  0x18   :  { %223 = vst [vmem:[%s339_s3 + $0x38] sm:$0xff] %v208_v1  }

// kernel: frac_blk_forward.4
= control target key start
LH: loop header
LB: loop body
LE: loop exit
PB: predicated region body
PF: predicated region fallthrough
CT: control target
= control target key end

     0   :  { %vm280_vm0 = vcmask 1040384   ;;  %vm282_vm1 = vcmask 1041408   ;;  %s545_s1 = inlined_call_operand.vmem [shape: bf16[128,128], index: 1, kind: input, shape index: {}]   ;;  %s546_s0 = inlined_call_operand.vmem [shape: bf16[128,128], index: 0, kind: input, shape index: {}]   ;;  %s547_s2 = inlined_call_operand.vmem [shape: bf16[128,128], index: 2, kind: output, shape index: {0}]   ;;  %s548_s3 = inlined_call_operand.vmem [shape: f32[1,8,128], index: 3, kind: output, shape index: {1}]  }
   0x1   :  { %v372_v0 = vld [vmem:[%s545_s1 + $0x38] sm:$0xff]  ;;  %v371_v1 = vld [vmem:[%s545_s1 + $0x30] sm:$0xff]  ;;  %v370_v2 = vld [vmem:[%s545_s1 + $0x28] sm:$0xff] }
   0x2   :  { %141 = vmatpush.bf16.msra.mxu0 %v372_v0  ;;  %420 = vmatpush.bf16.msra.mxu1 %v372_v0  ;;  %v369_v3 = vld [vmem:[%s545_s1 + $0x20] sm:$0xff]  ;;  %v368_v4 = vld [vmem:[%s545_s1 + $0x18] sm:$0xff]  ;;  %v367_v5 = vld [vmem:[%s545_s1 + $0x10] sm:$0xff] }
   0x3   :  { %421 = vmatpush.bf16.msra.mxu2 %v372_v0  ;;  %422 = vmatpush.bf16.msra.mxu3 %v372_v0  ;;  %v366_v6 = vld [vmem:[%s545_s1 + $0x8] sm:$0xff]  ;;  %v365_v7 = vld [vmem:[%s545_s1] sm:$0xff]  ;;  %v359_v9 = vld [vmem:[%s546_s0 + $0x10] sm:$0xff] }
   0x4   :  { %v357_v8 = vld [vmem:[%s546_s0] sm:$0xff]  ;;  %v363_v11 = vld [vmem:[%s546_s0 + $0x30] sm:$0xff]  ;;  %v358_v12 = vld [vmem:[%s546_s0 + $0x8] sm:$0xff] }
   0x5   :  { %v361_v10 = vld [vmem:[%s546_s0 + $0x20] sm:$0xff]  ;;  %v360_v13 = vld [vmem:[%s546_s0 + $0x18] sm:$0xff]  ;;  %v362_v14 = vld [vmem:[%s546_s0 + $0x28] sm:$0xff] }
   0x6   :  { %142 = vmatpush.bf16.msra.mxu0 %v371_v1  ;;  %423 = vmatpush.bf16.msra.mxu1 %v371_v1  ;;  %v364_v15 = vld [vmem:[%s546_s0 + $0x38] sm:$0xff] }
   0x7   :  { %424 = vmatpush.bf16.msra.mxu2 %v371_v1  ;;  %425 = vmatpush.bf16.msra.mxu3 %v371_v1 }
   0xa   :  { %143 = vmatpush.bf16.msra.mxu0 %v370_v2  ;;  %426 = vmatpush.bf16.msra.mxu1 %v370_v2 }
   0xb   :  { %427 = vmatpush.bf16.msra.mxu2 %v370_v2  ;;  %428 = vmatpush.bf16.msra.mxu3 %v370_v2 }
   0xe   :  { %144 = vmatpush.bf16.msra.mxu0 %v369_v3  ;;  %429 = vmatpush.bf16.msra.mxu1 %v369_v3 }
   0xf   :  { %430 = vmatpush.bf16.msra.mxu2 %v369_v3  ;;  %431 = vmatpush.bf16.msra.mxu3 %v369_v3 }
  0x12   :  { %145 = vmatpush.bf16.msra.mxu0 %v368_v4  ;;  %432 = vmatpush.bf16.msra.mxu1 %v368_v4 }
  0x13   :  { %433 = vmatpush.bf16.msra.mxu2 %v368_v4  ;;  %434 = vmatpush.bf16.msra.mxu3 %v368_v4 }
  0x16   :  { %146 = vmatpush.bf16.msra.mxu0 %v367_v5  ;;  %435 = vmatpush.bf16.msra.mxu1 %v367_v5 }
  0x17   :  { %436 = vmatpush.bf16.msra.mxu2 %v367_v5  ;;  %437 = vmatpush.bf16.msra.mxu3 %v367_v5 }
  0x1a   :  { %147 = vmatpush.bf16.msra.mxu0 %v366_v6  ;;  %438 = vmatpush.bf16.msra.mxu1 %v366_v6 }
  0x1b   :  { %439 = vmatpush.bf16.msra.mxu2 %v366_v6  ;;  %440 = vmatpush.bf16.msra.mxu3 %v366_v6 }
  0x1e   :  { %148 = vmatpush.bf16.msra.mxu0 %v365_v7  ;;  %441 = vmatpush.bf16.msra.mxu1 %v365_v7 }
  0x1f   :  { %442 = vmatpush.bf16.msra.mxu2 %v365_v7  ;;  %443 = vmatpush.bf16.msra.mxu3 %v365_v7 }
  0x21   :  { %149 = vmatmul.bf16.vlgmr.msra.gmra.mxu0 %v357_v8  ;;  %159 = vmatmul.bf16.vlgmr.msra.gmra.mxu1 %v359_v9 }
  0x22   :  { %169 = vmatmul.bf16.vlgmr.msra.gmra.mxu2 %v361_v10  ;;  %179 = vmatmul.bf16.vlgmr.msra.gmra.mxu3 %v363_v11 }
  0x31   :  { %154 = vmatmul.bf16.gmra.mxu0 %v358_v12  ;;  %164 = vmatmul.bf16.gmra.mxu1 %v360_v13 }
  0x32   :  { %174 = vmatmul.bf16.gmra.mxu2 %v362_v14  ;;  %184 = vmatmul.bf16.gmra.mxu3 %v364_v15 }
  0x9e   :  { %v150_v16 = vpop.f32.mrf.mxu0  ;;  %v160_v17 = vpop.f32.mrf.mxu1 }
  0x9f   :  { %v243_v31 = vmul.f32 %v150_v16, %v150_v16  ;;  %v247_v45 = vmul.f32 %v160_v17, %v160_v17 }
  0xa5   :  { %v170_v18 = vpop.f32.mrf.mxu2  ;;  %v512_v19 = vpop.f32.mrf.mxu3 }
  0xa6   :  { %v152_v20 = vpop.f32.mrf.mxu0  ;;  %v162_v21 = vpop.f32.mrf.mxu1  ;;  %v251_v61 = vmul.f32 %v170_v18, %v170_v18  ;;  %v255_v9 = vmul.f32 %v512_v19, %v512_v19 }
  0xa7   :  { %v376_v22 = vpack.c.bf16 %v152_v20, %v150_v16  ;;  %v386_v23 = vpack.c.bf16 %v162_v21, %v160_v17  ;;  %v244_v30 = vmul.f32 %v152_v20, %v152_v20  ;;  %v222_v33 = vadd.f32 %v152_v20, %v150_v16 }
  0xa8   :  { %v248_v48 = vmul.f32 %v162_v21, %v162_v21 }
  0xa9   :  { %377 = vst [vmem:[%s547_s2] sm:$0xff] %v376_v22   ;;  %v259_v34 = vadd.f32 %v244_v30, %v243_v31 }
  0xaa   :  { %414 = vst [vmem:[%s547_s2 + $0x10] sm:$0xff] %v386_v23  }
  0xad   :  { %v172_v24 = vpop.f32.mrf.mxu2  ;;  %v182_v25 = vpop.f32.mrf.mxu3 }
  0xae   :  { %v155_v26 = vpop.f32.mrf.mxu0  ;;  %v165_v27 = vpop.f32.mrf.mxu1  ;;  %v396_v28 = vpack.c.bf16 %v172_v24, %v170_v18  ;;  %v406_v29 = vpack.c.bf16 %v182_v25, %v512_v19  ;;  %v252_v0 = vmul.f32 %v172_v24, %v172_v24  ;;  %v256_v12 = vmul.f32 %v182_v25, %v182_v25 }
  0xaf   :  { %v245_v32 = vmul.f32 %v155_v26, %v155_v26  ;;  %v223_v35 = vadd.f32 %v222_v33, %v155_v26  ;;  %v249_v51 = vmul.f32 %v165_v27, %v165_v27 }
  0xb0   :  { %416 = vst [vmem:[%s547_s2 + $0x20] sm:$0xff] %v396_v28  }
  0xb1   :  { %418 = vst [vmem:[%s547_s2 + $0x30] sm:$0xff] %v406_v29   ;;  %v260_v38 = vadd.f32 %v259_v34, %v245_v32 }
  0xb5   :  { %v175_v36 = vpop.f32.mrf.mxu2  ;;  %v185_v37 = vpop.f32.mrf.mxu3 }
  0xb6   :  { %v157_v39 = vpop.f32.mrf.mxu0  ;;  %v167_v40 = vpop.f32.mrf.mxu1  ;;  %v253_v4 = vmul.f32 %v175_v36, %v175_v36  ;;  %v257_v16 = vmul.f32 %v185_v37, %v185_v37 }
  0xb7   :  { %v381_v41 = vpack.c.bf16 %v157_v39, %v155_v26  ;;  %v224_v42 = vadd.f32 %v223_v35, %v157_v39  ;;  %v246_v43 = vmul.f32 %v157_v39, %v157_v39  ;;  %v391_v44 = vpack.c.bf16 %v167_v40, %v165_v27 }
  0xb8   :  { %v250_v59 = vmul.f32 %v167_v40, %v167_v40 }
  0xb9   :  { %413 = vst [vmem:[%s547_s2 + $0x8] sm:$0xff] %v381_v41   ;;  %v225_v46 = vadd.f32 %v224_v42, %v160_v17  ;;  %v261_v47 = vadd.f32 %v260_v38, %v246_v43 }
  0xba   :  { %415 = vst [vmem:[%s547_s2 + $0x18] sm:$0xff] %v391_v44  }
  0xbb   :  { %v262_v49 = vadd.f32 %v261_v47, %v247_v45  ;;  %v226_v50 = vadd.f32 %v225_v46, %v162_v21 }
  0xbd   :  { %v227_v52 = vadd.f32 %v226_v50, %v165_v27  ;;  %v263_v53 = vadd.f32 %v262_v49, %v248_v48  ;;  %v177_v54 = vpop.f32.mrf.mxu2  ;;  %v187_v55 = vpop.f32.mrf.mxu3 }
  0xbe   :  { %v401_v56 = vpack.c.bf16 %v177_v54, %v175_v36  ;;  %v411_v57 = vpack.c.bf16 %v187_v55, %v185_v37  ;;  %v254_v8 = vmul.f32 %v177_v54, %v177_v54  ;;  %v258_v21 = vmul.f32 %v187_v55, %v187_v55 }
  0xbf   :  { %v228_v58 = vadd.f32 %v227_v52, %v167_v40  ;;  %v264_v60 = vadd.f32 %v263_v53, %v249_v51 }
  0xc0   :  { %417 = vst [vmem:[%s547_s2 + $0x28] sm:$0xff] %v401_v56  }
  0xc1   :  { %v229_v62 = vadd.f32 %v228_v58, %v170_v18  ;;  %v265_v63 = vadd.f32 %v264_v60, %v250_v59  ;;  %419 = vst [vmem:[%s547_s2 + $0x38] sm:$0xff] %v411_v57  }
  0xc3   :  { %v266_v1 = vadd.f32 %v265_v63, %v251_v61  ;;  %v230_v2 = vadd.f32 %v229_v62, %v172_v24 }
  0xc5   :  { %v231_v3 = vadd.f32 %v230_v2, %v175_v36  ;;  %v267_v5 = vadd.f32 %v266_v1, %v252_v0 }
  0xc7   :  { %v268_v6 = vadd.f32 %v267_v5, %v253_v4  ;;  %v232_v7 = vadd.f32 %v231_v3, %v177_v54 }
  0xc9   :  { %v233_v10 = vadd.f32 %v232_v7, %v512_v19  ;;  %v269_v11 = vadd.f32 %v268_v6, %v254_v8 }
  0xcb   :  { %v270_v13 = vadd.f32 %v269_v11, %v255_v9  ;;  %v234_v14 = vadd.f32 %v233_v10, %v182_v25 }
  0xcd   :  { %v235_v15 = vadd.f32 %v234_v14, %v185_v37  ;;  %v271_v17 = vadd.f32 %v270_v13, %v256_v12 }
  0xcf   :  { %v272_v18 = vadd.f32 %v271_v17, %v257_v16  ;;  %v236_v20 = vadd.f32 %v235_v15, %v187_v55 }
  0xd1   :  { %v237_v22 = vrot.slane %v236_v20, 4  ;;  %v273_v23 = vadd.f32 %v272_v18, %v258_v21 }
  0xd3   :  { %v238_v24 = vadd.f32 %v237_v22, %v236_v20  ;;  %v274_v26 = vrot.slane %v273_v23, 4 }
  0xd5   :  { %v239_v27 = vrot.slane %v238_v24, 2  ;;  %v275_v28 = vadd.f32 %v274_v26, %v273_v23 }
  0xd7   :  { %v240_v29 = vadd.f32 %v239_v27, %v238_v24  ;;  %v276_v30 = vrot.slane %v275_v28, 2 }
  0xd9   :  { %v241_v31 = vrot.slane %v240_v29, 1  ;;  %v277_v19 = vadd.f32 %v276_v30, %v275_v28 }
  0xdb   :  { %v278_v32 = vrot.slane %v277_v19, 1  ;;  %v242_v33 = vadd.f32 %v241_v31, %v240_v29 }
  0xdd   :  { %v279_v25 = vadd.f32 %v278_v32, %v277_v19 }
  0xdf   :  { %v281_v34 = vsel %vm280_vm0, %v242_v33, %v279_v25 }
  0xe0   :  { %v283_v35 = vsel %vm282_vm1, %v281_v34, 0.0 }
  0xe1   :  { %284 = vst [vmem:[%s548_s3] sm:$0xff] %v283_v35 }

// kernel: frac_blk_forward.7
= control target key start
LH: loop header
LB: loop body
LE: loop exit
PB: predicated region body
PF: predicated region fallthrough
CT: control target
= control target key end

     0   :  { %s500_s0 = inlined_call_operand.vmem [shape: bf16[128,128], index: 0, kind: input, shape index: {}]   ;;  %s501_s1 = inlined_call_operand.vmem [shape: f32[1,128], index: 1, kind: input, shape index: {}]   ;;  %s502_s2 = inlined_call_operand.vmem [shape: f32[1,128], index: 2, kind: input, shape index: {}]   ;;  %s503_s3 = inlined_call_operand.vmem [shape: bf16[128,128], index: 3, kind: input, shape index: {}]   ;;  %s504_s4 = inlined_call_operand.vmem [shape: f32[1,128], index: 4, kind: input, shape index: {}]   ;;  %s505_s5 = inlined_call_operand.vmem [shape: f32[1,128], index: 5, kind: input, shape index: {}]   ;;  %s506_s6 = inlined_call_operand.vmem [shape: f32[128,128], index: 6, kind: output, shape index: {}]  }
   0x1   :  { %v204_v0 = vld [vmem:[%s500_s0] sm:$0xff]   ;;  %v267_v11 = vld [vmem:[%s500_s0 + $0x8] sm:$0xff]   ;;  %v268_v17 = vld [vmem:[%s500_s0 + $0x10] sm:$0xff]  }
   0x2   :  { %v326_v1 = vld [vmem:[%s501_s1] ss:$0 sm:$0xff]  ;;  %v205_v2 = vunpack.c.l.bf16 %v204_v0  ;;  %v206_v5 = vunpack.c.h.bf16 %v204_v0  ;;  %v274_v12 = vld [vmem:[%s503_s3 + $0x8] sm:$0xff]   ;;  %v209_v15 = vunpack.c.l.bf16 %v267_v11  ;;  %v275_v18 = vld [vmem:[%s503_s3 + $0x10] sm:$0xff]   ;;  %v210_v22 = vunpack.c.h.bf16 %v267_v11 }
   0x3   :  { %v331_v3 = vld [vmem:[%s502_s2] ss:$0 sm:$0xff]  ;;  %v241_v16 = vunpack.c.l.bf16 %v274_v12  ;;  %v242_v23 = vunpack.c.h.bf16 %v274_v12  ;;  %v213_v26 = vunpack.c.l.bf16 %v268_v17  ;;  %v245_v27 = vunpack.c.l.bf16 %v275_v18  ;;  %v269_v32 = vld [vmem:[%s500_s0 + $0x18] sm:$0xff]   ;;  %v271_v0 = vld [vmem:[%s500_s0 + $0x28] sm:$0xff]  }
   0x4   :  { %v236_v4 = vld [vmem:[%s503_s3] sm:$0xff]   ;;  %v59_v9 = vmul.f32 %v326_v1, %v205_v2  ;;  %v60_v10 = vmul.f32 %v326_v1, %v206_v5  ;;  %v61_v24 = vmul.f32 %v326_v1, %v209_v15  ;;  %v62_v30 = vmul.f32 %v326_v1, %v210_v22  ;;  %v276_v37 = vld [vmem:[%s503_s3 + $0x18] sm:$0xff]  }
   0x5   :  { %v237_v6 = vunpack.c.l.bf16 %v236_v4  ;;  %v339_v7 = vld [vmem:[%s504_s4] ss:$0 sm:$0xff]  ;;  %v238_v8 = vunpack.c.h.bf16 %v236_v4  ;;  %v63_v34 = vmul.f32 %v326_v1, %v213_v26  ;;  %v214_v36 = vunpack.c.h.bf16 %v268_v17  ;;  %v272_v17 = vld [vmem:[%s500_s0 + $0x30] sm:$0xff]  }
   0x6   :  { %v79_v19 = vadd.f32 %v331_v3, %v59_v9  ;;  %v361_v20 = vld [vmem:[%s505_s5] ss:$0 sm:$0xff]  ;;  %v80_v21 = vadd.f32 %v331_v3, %v60_v10  ;;  %v133_v25 = vmul.f32 %v339_v7, %v241_v16  ;;  %v134_v31 = vmul.f32 %v339_v7, %v242_v23  ;;  %v279_v23 = vld [vmem:[%s503_s3 + $0x30] sm:$0xff]  }
   0x7   :  { %v131_v13 = vmul.f32 %v339_v7, %v237_v6  ;;  %v132_v14 = vmul.f32 %v339_v7, %v238_v8  ;;  %v81_v33 = vadd.f32 %v331_v3, %v61_v24  ;;  %v135_v35 = vmul.f32 %v339_v7, %v245_v27  ;;  %v270_v50 = vld [vmem:[%s500_s0 + $0x20] sm:$0xff]   ;;  %v278_v8 = vld [vmem:[%s503_s3 + $0x28] sm:$0xff]  }
   0x8   :  { %v82_v40 = vadd.f32 %v331_v3, %v62_v30  ;;  %v246_v41 = vunpack.c.h.bf16 %v275_v18  ;;  %v83_v43 = vadd.f32 %v331_v3, %v63_v34  ;;  %v64_v44 = vmul.f32 %v326_v1, %v214_v36  ;;  %v277_v55 = vld [vmem:[%s503_s3 + $0x20] sm:$0xff]   ;;  %v273_v36 = vld [vmem:[%s500_s0 + $0x38] sm:$0xff]  }
   0x9   :  { %v147_v28 = vadd.f32 %v131_v13, %v79_v19  ;;  %v148_v29 = vadd.f32 %v132_v14, %v80_v21  ;;  %v149_v42 = vadd.f32 %v133_v25, %v81_v33  ;;  %v217_v45 = vunpack.c.l.bf16 %v269_v32 }
   0xa   :  { %v150_v46 = vadd.f32 %v134_v31, %v82_v40  ;;  %v136_v47 = vmul.f32 %v339_v7, %v246_v41  ;;  %v249_v48 = vunpack.c.l.bf16 %v276_v37  ;;  %v218_v49 = vunpack.c.h.bf16 %v269_v32  ;;  %v280_v41 = vld [vmem:[%s503_s3 + $0x38] sm:$0xff]  }
   0xb   :  { %v167_v38 = vadd.f32 %v361_v20, %v147_v28  ;;  %v168_v39 = vadd.f32 %v361_v20, %v148_v29  ;;  %v169_v51 = vadd.f32 %v361_v20, %v149_v42  ;;  %v151_v52 = vadd.f32 %v135_v35, %v83_v43 }
   0xc   :  { %v84_v53 = vadd.f32 %v331_v3, %v64_v44  ;;  %v65_v54 = vmul.f32 %v326_v1, %v217_v45  ;;  %v170_v56 = vadd.f32 %v361_v20, %v150_v46  ;;  %v137_v57 = vmul.f32 %v339_v7, %v249_v48 }
   0xd   :  { %183 = vst [vmem:[%s506_s6] sm:$0xff] %v167_v38  ;;  %v66_v58 = vmul.f32 %v326_v1, %v218_v49  ;;  %v250_v59 = vunpack.c.h.bf16 %v276_v37  ;;  %v171_v60 = vadd.f32 %v361_v20, %v151_v52  ;;  %v221_v63 = vunpack.c.l.bf16 %v270_v50 }
   0xe   :  { %184 = vst [vmem:[%s506_s6 + $0x8] sm:$0xff] %v168_v39  ;;  %v152_v61 = vadd.f32 %v136_v47, %v84_v53  ;;  %v85_v62 = vadd.f32 %v331_v3, %v65_v54  ;;  %v253_v5 = vunpack.c.l.bf16 %v277_v55  ;;  %v222_v6 = vunpack.c.h.bf16 %v270_v50 }
   0xf   :  { %185 = vst [vmem:[%s506_s6 + $0x10] sm:$0xff] %v169_v51  ;;  %v86_v2 = vadd.f32 %v331_v3, %v66_v58  ;;  %v138_v4 = vmul.f32 %v339_v7, %v250_v59  ;;  %v67_v11 = vmul.f32 %v326_v1, %v221_v63  ;;  %v254_v12 = vunpack.c.h.bf16 %v277_v55 }
  0x10   :  { %186 = vst [vmem:[%s506_s6 + $0x18] sm:$0xff] %v170_v56  ;;  %v172_v9 = vadd.f32 %v361_v20, %v152_v61  ;;  %v153_v10 = vadd.f32 %v137_v57, %v85_v62  ;;  %v139_v14 = vmul.f32 %v339_v7, %v253_v5  ;;  %v68_v15 = vmul.f32 %v326_v1, %v222_v6 }
  0x11   :  { %187 = vst [vmem:[%s506_s6 + $0x20] sm:$0xff] %v171_v60  ;;  %v154_v13 = vadd.f32 %v138_v4, %v86_v2  ;;  %v225_v16 = vunpack.c.l.bf16 %v271_v0  ;;  %v87_v19 = vadd.f32 %v331_v3, %v67_v11  ;;  %v140_v21 = vmul.f32 %v339_v7, %v254_v12 }
  0x12   :  { %188 = vst [vmem:[%s506_s6 + $0x28] sm:$0xff] %v172_v9  ;;  %v173_v18 = vadd.f32 %v361_v20, %v153_v10  ;;  %v257_v22 = vunpack.c.l.bf16 %v278_v8  ;;  %v88_v25 = vadd.f32 %v331_v3, %v68_v15  ;;  %v226_v27 = vunpack.c.h.bf16 %v271_v0 }
  0x13   :  { %v174_v24 = vadd.f32 %v361_v20, %v154_v13  ;;  %v69_v26 = vmul.f32 %v326_v1, %v225_v16  ;;  %v155_v28 = vadd.f32 %v139_v14, %v87_v19  ;;  %v258_v30 = vunpack.c.h.bf16 %v278_v8 }
  0x14   :  { %189 = vst [vmem:[%s506_s6 + $0x30] sm:$0xff] %v173_v18  ;;  %v141_v29 = vmul.f32 %v339_v7, %v257_v22  ;;  %v229_v31 = vunpack.c.l.bf16 %v272_v17  ;;  %v156_v32 = vadd.f32 %v140_v21, %v88_v25  ;;  %v70_v34 = vmul.f32 %v326_v1, %v226_v27 }
  0x15   :  { %190 = vst [vmem:[%s506_s6 + $0x38] sm:$0xff] %v174_v24  ;;  %v89_v33 = vadd.f32 %v331_v3, %v69_v26  ;;  %v261_v35 = vunpack.c.l.bf16 %v279_v23  ;;  %v175_v37 = vadd.f32 %v361_v20, %v155_v28  ;;  %v142_v38 = vmul.f32 %v339_v7, %v258_v30 }
  0x16   :  { %v71_v39 = vmul.f32 %v326_v1, %v229_v31  ;;  %v230_v40 = vunpack.c.h.bf16 %v272_v17  ;;  %v176_v42 = vadd.f32 %v361_v20, %v156_v32  ;;  %v90_v44 = vadd.f32 %v331_v3, %v70_v34 }
  0x17   :  { %v157_v43 = vadd.f32 %v141_v29, %v89_v33  ;;  %v143_v45 = vmul.f32 %v339_v7, %v261_v35  ;;  %191 = vst [vmem:[%s506_s6 + $0x40] sm:$0xff] %v175_v37  ;;  %v262_v48 = vunpack.c.h.bf16 %v279_v23  ;;  %v233_v49 = vunpack.c.l.bf16 %v273_v36 }
  0x18   :  { %v91_v46 = vadd.f32 %v331_v3, %v71_v39  ;;  %v72_v47 = vmul.f32 %v326_v1, %v230_v40  ;;  %192 = vst [vmem:[%s506_s6 + $0x48] sm:$0xff] %v176_v42  ;;  %v158_v51 = vadd.f32 %v142_v38, %v90_v44  ;;  %v265_v52 = vunpack.c.l.bf16 %v280_v41 }
  0x19   :  { %v177_v50 = vadd.f32 %v361_v20, %v157_v43  ;;  %v234_v53 = vunpack.c.h.bf16 %v273_v36  ;;  %v144_v56 = vmul.f32 %v339_v7, %v262_v48  ;;  %v73_v57 = vmul.f32 %v326_v1, %v233_v49 }
  0x1a   :  { %v159_v54 = vadd.f32 %v143_v45, %v91_v46  ;;  %v92_v55 = vadd.f32 %v331_v3, %v72_v47  ;;  %v178_v58 = vadd.f32 %v361_v20, %v158_v51  ;;  %v145_v59 = vmul.f32 %v339_v7, %v265_v52 }
  0x1b   :  { %193 = vst [vmem:[%s506_s6 + $0x50] sm:$0xff] %v177_v50  ;;  %v74_v60 = vmul.f32 %v326_v1, %v234_v53  ;;  %v266_v61 = vunpack.c.h.bf16 %v280_v41  ;;  %v93_v0 = vadd.f32 %v331_v3, %v73_v57 }
  0x1c   :  { %v179_v62 = vadd.f32 %v361_v20, %v159_v54  ;;  %v160_v63 = vadd.f32 %v144_v56, %v92_v55  ;;  %194 = vst [vmem:[%s506_s6 + $0x58] sm:$0xff] %v178_v58 }
  0x1d   :  { %v94_v2 = vadd.f32 %v331_v3, %v74_v60  ;;  %v146_v4 = vmul.f32 %v339_v7, %v266_v61  ;;  %v161_v5 = vadd.f32 %v145_v59, %v93_v0 }
  0x1e   :  { %195 = vst [vmem:[%s506_s6 + $0x60] sm:$0xff] %v179_v62  ;;  %v180_v1 = vadd.f32 %v361_v20, %v160_v63 }
  0x1f   :  { %v162_v6 = vadd.f32 %v146_v4, %v94_v2  ;;  %v181_v8 = vadd.f32 %v361_v20, %v161_v5 }
  0x20   :  { %196 = vst [vmem:[%s506_s6 + $0x68] sm:$0xff] %v180_v1 }
  0x21   :  { %v182_v9 = vadd.f32 %v361_v20, %v162_v6  ;;  %197 = vst [vmem:[%s506_s6 + $0x70] sm:$0xff] %v181_v8 }
  0x23   :  { %198 = vst [vmem:[%s506_s6 + $0x78] sm:$0xff] %v182_v9 }

// kernel: frac_blk_forward.6
= control target key start
LH: loop header
LB: loop body
LE: loop exit
PB: predicated region body
PF: predicated region fallthrough
CT: control target
= control target key end

     0   :  { %vm288_vm0 = vcmask 1040384   ;;  %vm290_vm1 = vcmask 1041408   ;;  %s1111_s1 = inlined_call_operand.vmem [shape: bf16[128,128], index: 1, kind: input, shape index: {}]   ;;  %s1112_s3 = inlined_call_operand.vmem [shape: bf16[128,128], index: 3, kind: input, shape index: {}]   ;;  %s1113_s0 = inlined_call_operand.vmem [shape: bf16[128,128], index: 0, kind: input, shape index: {}]   ;;  %s1114_s2 = inlined_call_operand.vmem [shape: bf16[128,128], index: 2, kind: input, shape index: {}]   ;;  %s1115_s4 = inlined_call_operand.vmem [shape: bf16[128,128], index: 4, kind: output, shape index: {0}]   ;;  %s1116_s6 = inlined_call_operand.vmem [shape: bf16[128,128], index: 6, kind: output, shape index: {2}]   ;;  %s1117_s5 = inlined_call_operand.vmem [shape: f32[1,8,128], index: 5, kind: output, shape index: {1}]   ;;  %s1118_s7 = inlined_call_operand.vmem [shape: f32[1,8,128], index: 7, kind: output, shape index: {3}]  }
   0x1   :  { %v722_v0 = vld [vmem:[%s1111_s1 + $0x38] sm:$0xff]  ;;  %v721_v2 = vld [vmem:[%s1111_s1 + $0x30] sm:$0xff]  ;;  %v720_v4 = vld [vmem:[%s1111_s1 + $0x28] sm:$0xff] }
   0x2   :  { %v738_v1 = vld [vmem:[%s1112_s3 + $0x38] sm:$0xff]  ;;  %149 = vmatpush.bf16.msra.mxu0 %v722_v0  ;;  %v737_v3 = vld [vmem:[%s1112_s3 + $0x30] sm:$0xff]  ;;  %833 = vmatpush.bf16.msra.mxu2 %v722_v0  ;;  %v736_v5 = vld [vmem:[%s1112_s3 + $0x28] sm:$0xff] }
   0x3   :  { %421 = vmatpush.bf16.msra.mxu1 %v738_v1  ;;  %841 = vmatpush.bf16.msra.mxu3 %v738_v1  ;;  %v719_v6 = vld [vmem:[%s1111_s1 + $0x20] sm:$0xff]  ;;  %v718_v8 = vld [vmem:[%s1111_s1 + $0x18] sm:$0xff]  ;;  %v717_v10 = vld [vmem:[%s1111_s1 + $0x10] sm:$0xff] }
   0x4   :  { %v735_v7 = vld [vmem:[%s1112_s3 + $0x20] sm:$0xff]  ;;  %v734_v9 = vld [vmem:[%s1112_s3 + $0x18] sm:$0xff]  ;;  %v733_v11 = vld [vmem:[%s1112_s3 + $0x10] sm:$0xff] }
   0x5   :  { %v716_v12 = vld [vmem:[%s1111_s1 + $0x8] sm:$0xff]  ;;  %v715_v14 = vld [vmem:[%s1111_s1] sm:$0xff]  ;;  %v709_v24 = vld [vmem:[%s1113_s0 + $0x10] sm:$0xff] }
   0x6   :  { %150 = vmatpush.bf16.msra.mxu0 %v721_v2  ;;  %834 = vmatpush.bf16.msra.mxu2 %v721_v2  ;;  %v732_v13 = vld [vmem:[%s1112_s3 + $0x8] sm:$0xff]  ;;  %v731_v15 = vld [vmem:[%s1112_s3] sm:$0xff]  ;;  %v725_v25 = vld [vmem:[%s1114_s2 + $0x10] sm:$0xff] }
   0x7   :  { %422 = vmatpush.bf16.msra.mxu1 %v737_v3  ;;  %842 = vmatpush.bf16.msra.mxu3 %v737_v3  ;;  %v707_v16 = vld [vmem:[%s1113_s0] sm:$0xff]  ;;  %v708_v20 = vld [vmem:[%s1113_s0 + $0x8] sm:$0xff]  ;;  %v713_v26 = vld [vmem:[%s1113_s0 + $0x30] sm:$0xff] }
   0x8   :  { %v723_v17 = vld [vmem:[%s1114_s2] sm:$0xff]  ;;  %v724_v21 = vld [vmem:[%s1114_s2 + $0x8] sm:$0xff]  ;;  %v729_v27 = vld [vmem:[%s1114_s2 + $0x30] sm:$0xff] }
   0x9   :  { %v711_v18 = vld [vmem:[%s1113_s0 + $0x20] sm:$0xff]  ;;  %v712_v22 = vld [vmem:[%s1113_s0 + $0x28] sm:$0xff]  ;;  %v710_v28 = vld [vmem:[%s1113_s0 + $0x18] sm:$0xff] }
   0xa   :  { %151 = vmatpush.bf16.msra.mxu0 %v720_v4  ;;  %835 = vmatpush.bf16.msra.mxu2 %v720_v4  ;;  %v727_v19 = vld [vmem:[%s1114_s2 + $0x20] sm:$0xff]  ;;  %v728_v23 = vld [vmem:[%s1114_s2 + $0x28] sm:$0xff]  ;;  %v726_v29 = vld [vmem:[%s1114_s2 + $0x18] sm:$0xff] }
   0xb   :  { %423 = vmatpush.bf16.msra.mxu1 %v736_v5  ;;  %843 = vmatpush.bf16.msra.mxu3 %v736_v5  ;;  %v714_v30 = vld [vmem:[%s1113_s0 + $0x38] sm:$0xff] }
   0xc   :  { %v730_v31 = vld [vmem:[%s1114_s2 + $0x38] sm:$0xff] }
   0xe   :  { %152 = vmatpush.bf16.msra.mxu0 %v719_v6  ;;  %836 = vmatpush.bf16.msra.mxu2 %v719_v6 }
   0xf   :  { %424 = vmatpush.bf16.msra.mxu1 %v735_v7  ;;  %844 = vmatpush.bf16.msra.mxu3 %v735_v7 }
  0x12   :  { %153 = vmatpush.bf16.msra.mxu0 %v718_v8  ;;  %837 = vmatpush.bf16.msra.mxu2 %v718_v8 }
  0x13   :  { %425 = vmatpush.bf16.msra.mxu1 %v734_v9  ;;  %845 = vmatpush.bf16.msra.mxu3 %v734_v9 }
  0x16   :  { %154 = vmatpush.bf16.msra.mxu0 %v717_v10  ;;  %838 = vmatpush.bf16.msra.mxu2 %v717_v10 }
  0x17   :  { %426 = vmatpush.bf16.msra.mxu1 %v733_v11  ;;  %846 = vmatpush.bf16.msra.mxu3 %v733_v11 }
  0x1a   :  { %155 = vmatpush.bf16.msra.mxu0 %v716_v12  ;;  %839 = vmatpush.bf16.msra.mxu2 %v716_v12 }
  0x1b   :  { %427 = vmatpush.bf16.msra.mxu1 %v732_v13  ;;  %847 = vmatpush.bf16.msra.mxu3 %v732_v13 }
  0x1e   :  { %156 = vmatpush.bf16.msra.mxu0 %v715_v14  ;;  %840 = vmatpush.bf16.msra.mxu2 %v715_v14 }
  0x1f   :  { %428 = vmatpush.bf16.msra.mxu1 %v731_v15  ;;  %848 = vmatpush.bf16.msra.mxu3 %v731_v15 }
  0x21   :  { %157 = vmatmul.bf16.vlgmr.msra.gmra.mxu0 %v707_v16  ;;  %177 = vmatmul.bf16.vlgmr.msra.gmra.mxu2 %v711_v18 }
  0x22   :  { %429 = vmatmul.bf16.vlgmr.msra.gmra.mxu1 %v723_v17  ;;  %449 = vmatmul.bf16.vlgmr.msra.gmra.mxu3 %v727_v19 }
  0x31   :  { %162 = vmatmul.bf16.gmra.mxu0 %v708_v20  ;;  %182 = vmatmul.bf16.gmra.mxu2 %v712_v22 }
  0x32   :  { %434 = vmatmul.bf16.gmra.mxu1 %v724_v21  ;;  %454 = vmatmul.bf16.gmra.mxu3 %v728_v23 }
  0x41   :  { %167 = vmatmul.bf16.gmra.mxu0 %v709_v24  ;;  %187 = vmatmul.bf16.gmra.mxu2 %v713_v26 }
  0x42   :  { %439 = vmatmul.bf16.gmra.mxu1 %v725_v25  ;;  %459 = vmatmul.bf16.gmra.mxu3 %v729_v27 }
  0x51   :  { %172 = vmatmul.bf16.gmra.mxu0 %v710_v28  ;;  %192 = vmatmul.bf16.gmra.mxu2 %v714_v30 }
  0x52   :  { %444 = vmatmul.bf16.gmra.mxu1 %v726_v29  ;;  %464 = vmatmul.bf16.gmra.mxu3 %v730_v31 }
  0x9e   :  { %v158_v32 = vpop.f32.mrf.mxu0 }
  0x9f   :  { %v430_v33 = vpop.f32.mrf.mxu1  ;;  %v251_v2 = vmul.f32 %v158_v32, %v158_v32 }
  0xa0   :  { %v523_v4 = vmul.f32 %v430_v33, %v430_v33 }
  0xa4   :  { %v985_v34 = vpop.f32.mrf.mxu2 }
  0xa5   :  { %v987_v35 = vpop.f32.mrf.mxu3 }
  0xa6   :  { %v160_v36 = vpop.f32.mrf.mxu0 }
  0xa7   :  { %v432_v37 = vpop.f32.mrf.mxu1  ;;  %v742_v38 = vpack.c.bf16 %v160_v36, %v158_v32  ;;  %v252_v0 = vmul.f32 %v160_v36, %v160_v36  ;;  %v230_v5 = vadd.f32 %v160_v36, %v158_v32 }
  0xa8   :  { %v782_v39 = vpack.c.bf16 %v432_v37, %v430_v33  ;;  %v524_v1 = vmul.f32 %v432_v37, %v432_v37  ;;  %v502_v6 = vadd.f32 %v432_v37, %v430_v33 }
  0xa9   :  { %743 = vst [vmem:[%s1115_s4] sm:$0xff] %v742_v38   ;;  %v267_v8 = vadd.f32 %v252_v0, %v251_v2 }
  0xaa   :  { %783 = vst [vmem:[%s1116_s6] sm:$0xff] %v782_v39   ;;  %v539_v10 = vadd.f32 %v524_v1, %v523_v4 }
  0xac   :  { %v995_v40 = vpop.f32.mrf.mxu2 }
  0xad   :  { %v997_v41 = vpop.f32.mrf.mxu3  ;;  %v762_v43 = vpack.c.bf16 %v995_v40, %v985_v34 }
  0xae   :  { %v163_v42 = vpop.f32.mrf.mxu0  ;;  %v802_v45 = vpack.c.bf16 %v997_v41, %v987_v35 }
  0xaf   :  { %v435_v44 = vpop.f32.mrf.mxu1  ;;  %822 = vst [vmem:[%s1115_s4 + $0x20] sm:$0xff] %v762_v43   ;;  %v253_v3 = vmul.f32 %v163_v42, %v163_v42  ;;  %v231_v11 = vadd.f32 %v230_v5, %v163_v42 }
  0xb0   :  { %829 = vst [vmem:[%s1116_s6 + $0x20] sm:$0xff] %v802_v45   ;;  %v525_v7 = vmul.f32 %v435_v44, %v435_v44  ;;  %v503_v12 = vadd.f32 %v502_v6, %v435_v44  ;;  %v260_v6 = vmul.f32 %v995_v40, %v995_v40 }
  0xb1   :  { %v268_v16 = vadd.f32 %v267_v8, %v253_v3  ;;  %v531_v3 = vmul.f32 %v987_v35, %v987_v35 }
  0xb2   :  { %v540_v22 = vadd.f32 %v539_v10, %v525_v7 }
  0xb4   :  { %v1009_v46 = vpop.f32.mrf.mxu2 }
  0xb5   :  { %v1011_v47 = vpop.f32.mrf.mxu3 }
  0xb6   :  { %v165_v48 = vpop.f32.mrf.mxu0 }
  0xb7   :  { %v437_v49 = vpop.f32.mrf.mxu1  ;;  %v747_v50 = vpack.c.bf16 %v165_v48, %v163_v42  ;;  %v254_v9 = vmul.f32 %v165_v48, %v165_v48  ;;  %v232_v23 = vadd.f32 %v231_v11, %v165_v48  ;;  %v261_v11 = vmul.f32 %v1009_v46, %v1009_v46 }
  0xb8   :  { %v787_v51 = vpack.c.bf16 %v437_v49, %v435_v44  ;;  %v526_v13 = vmul.f32 %v437_v49, %v437_v49  ;;  %v504_v25 = vadd.f32 %v503_v12, %v437_v49 }
  0xb9   :  { %819 = vst [vmem:[%s1115_s4 + $0x8] sm:$0xff] %v747_v50   ;;  %v269_v24 = vadd.f32 %v268_v16, %v254_v9 }
  0xba   :  { %826 = vst [vmem:[%s1116_s6 + $0x8] sm:$0xff] %v787_v51   ;;  %v541_v28 = vadd.f32 %v540_v22, %v526_v13 }
  0xbc   :  { %v1019_v52 = vpop.f32.mrf.mxu2 }
  0xbd   :  { %v1021_v53 = vpop.f32.mrf.mxu3  ;;  %v767_v55 = vpack.c.bf16 %v1019_v52, %v1009_v46 }
  0xbe   :  { %v168_v54 = vpop.f32.mrf.mxu0  ;;  %v807_v57 = vpack.c.bf16 %v1021_v53, %v1011_v47 }
  0xbf   :  { %v440_v56 = vpop.f32.mrf.mxu1  ;;  %823 = vst [vmem:[%s1115_s4 + $0x28] sm:$0xff] %v767_v55   ;;  %v255_v17 = vmul.f32 %v168_v54, %v168_v54  ;;  %v233_v29 = vadd.f32 %v232_v23, %v168_v54 }
  0xc0   :  { %830 = vst [vmem:[%s1116_s6 + $0x28] sm:$0xff] %v807_v57   ;;  %v527_v26 = vmul.f32 %v440_v56, %v440_v56  ;;  %v505_v31 = vadd.f32 %v504_v25, %v440_v56 }
  0xc1   :  { %v270_v30 = vadd.f32 %v269_v24, %v255_v17  ;;  %v533_v17 = vmul.f32 %v1011_v47, %v1011_v47 }
  0xc2   :  { %v542_v37 = vadd.f32 %v541_v28, %v527_v26 }
  0xc4   :  { %v1033_v58 = vpop.f32.mrf.mxu2 }
  0xc5   :  { %v1035_v59 = vpop.f32.mrf.mxu3 }
  0xc6   :  { %v170_v60 = vpop.f32.mrf.mxu0 }
  0xc7   :  { %v442_v61 = vpop.f32.mrf.mxu1  ;;  %v752_v62 = vpack.c.bf16 %v170_v60, %v168_v54  ;;  %v256_v27 = vmul.f32 %v170_v60, %v170_v60  ;;  %v234_v36 = vadd.f32 %v233_v29, %v170_v60  ;;  %v259_v60 = vmul.f32 %v985_v34, %v985_v34 }
  0xc8   :  { %v792_v63 = vpack.c.bf16 %v442_v61, %v440_v56  ;;  %v528_v32 = vmul.f32 %v442_v61, %v442_v61  ;;  %v506_v39 = vadd.f32 %v505_v31, %v442_v61 }
  0xc9   :  { %820 = vst [vmem:[%s1115_s4 + $0x10] sm:$0xff] %v752_v62   ;;  %v271_v38 = vadd.f32 %v270_v30, %v256_v27 }
  0xca   :  { %827 = vst [vmem:[%s1116_s6 + $0x10] sm:$0xff] %v792_v63   ;;  %v543_v48 = vadd.f32 %v542_v37, %v528_v32 }
  0xcc   :  { %v1043_v14 = vpop.f32.mrf.mxu2 }
  0xcd   :  { %v1045_v15 = vpop.f32.mrf.mxu3  ;;  %v772_v19 = vpack.c.bf16 %v1043_v14, %v1033_v58  ;;  %v264_v28 = vmul.f32 %v1043_v14, %v1043_v14 }
  0xce   :  { %v173_v18 = vpop.f32.mrf.mxu0  ;;  %v812_v21 = vpack.c.bf16 %v1045_v15, %v1035_v59 }
  0xcf   :  { %v445_v20 = vpop.f32.mrf.mxu1  ;;  %824 = vst [vmem:[%s1115_s4 + $0x30] sm:$0xff] %v772_v19   ;;  %v257_v33 = vmul.f32 %v173_v18, %v173_v18  ;;  %v235_v43 = vadd.f32 %v234_v36, %v173_v18 }
  0xd0   :  { %831 = vst [vmem:[%s1116_s6 + $0x30] sm:$0xff] %v812_v21   ;;  %v529_v42 = vmul.f32 %v445_v20, %v445_v20  ;;  %v507_v50 = vadd.f32 %v506_v39, %v445_v20 }
  0xd1   :  { %v272_v49 = vadd.f32 %v271_v38, %v257_v33 }
  0xd2   :  { %v544_v56 = vadd.f32 %v543_v48, %v529_v42 }
  0xd4   :  { %v193_v44 = vpop.f32.mrf.mxu2 }
  0xd5   :  { %v465_v45 = vpop.f32.mrf.mxu3  ;;  %v265_v36 = vmul.f32 %v193_v44, %v193_v44 }
  0xd6   :  { %v175_v51 = vpop.f32.mrf.mxu0  ;;  %v537_v39 = vmul.f32 %v465_v45, %v465_v45 }
  0xd7   :  { %v447_v54 = vpop.f32.mrf.mxu1  ;;  %v757_v55 = vpack.c.bf16 %v175_v51, %v173_v18  ;;  %v236_v57 = vadd.f32 %v235_v43, %v175_v51  ;;  %v258_v62 = vmul.f32 %v175_v51, %v175_v51 }
  0xd8   :  { %v797_v63 = vpack.c.bf16 %v447_v54, %v445_v20  ;;  %v508_v0 = vadd.f32 %v507_v50, %v447_v54  ;;  %v530_v1 = vmul.f32 %v447_v54, %v447_v54  ;;  %v262_v20 = vmul.f32 %v1019_v52, %v1019_v52 }
  0xd9   :  { %821 = vst [vmem:[%s1115_s4 + $0x18] sm:$0xff] %v757_v55   ;;  %v237_v61 = vadd.f32 %v236_v57, %v985_v34  ;;  %v273_v2 = vadd.f32 %v272_v49, %v258_v62  ;;  %v532_v34 = vmul.f32 %v997_v41, %v997_v41 }
  0xda   :  { %828 = vst [vmem:[%s1116_s6 + $0x18] sm:$0xff] %v797_v63   ;;  %v509_v4 = vadd.f32 %v508_v0, %v987_v35  ;;  %v545_v5 = vadd.f32 %v544_v56, %v530_v1 }
  0xdb   :  { %v238_v7 = vadd.f32 %v237_v61, %v995_v40  ;;  %v274_v8 = vadd.f32 %v273_v2, %v259_v60 }
  0xdc   :  { %v510_v9 = vadd.f32 %v509_v4, %v997_v41  ;;  %v546_v10 = vadd.f32 %v545_v5, %v531_v3  ;;  %v195_v35 = vpop.f32.mrf.mxu2 }
  0xdd   :  { %v239_v12 = vadd.f32 %v238_v7, %v1009_v46  ;;  %v275_v13 = vadd.f32 %v274_v8, %v260_v6  ;;  %v467_v16 = vpop.f32.mrf.mxu3  ;;  %v777_v19 = vpack.c.bf16 %v195_v35, %v193_v44  ;;  %v534_v46 = vmul.f32 %v1021_v53, %v1021_v53 }
  0xde   :  { %v511_v40 = vadd.f32 %v510_v9, %v1011_v47  ;;  %v547_v18 = vadd.f32 %v546_v10, %v532_v34  ;;  %v817_v22 = vpack.c.bf16 %v467_v16, %v465_v45  ;;  %v263_v47 = vmul.f32 %v1033_v58, %v1033_v58 }
  0xdf   :  { %v276_v41 = vadd.f32 %v275_v13, %v261_v11  ;;  %v240_v21 = vadd.f32 %v239_v12, %v1019_v52  ;;  %825 = vst [vmem:[%s1115_s4 + $0x38] sm:$0xff] %v777_v19   ;;  %v535_v52 = vmul.f32 %v1035_v59, %v1035_v59  ;;  %v266_v48 = vmul.f32 %v195_v35, %v195_v35 }
  0xe0   :  { %v548_v23 = vadd.f32 %v547_v18, %v533_v17  ;;  %v512_v24 = vadd.f32 %v511_v40, %v1021_v53  ;;  %832 = vst [vmem:[%s1116_s6 + $0x38] sm:$0xff] %v817_v22   ;;  %v538_v51 = vmul.f32 %v467_v16, %v467_v16 }
  0xe1   :  { %v241_v25 = vadd.f32 %v240_v21, %v1033_v58  ;;  %v277_v26 = vadd.f32 %v276_v41, %v262_v20  ;;  %v536_v58 = vmul.f32 %v1045_v15, %v1045_v15 }
  0xe2   :  { %v513_v27 = vadd.f32 %v512_v24, %v1035_v59  ;;  %v549_v53 = vadd.f32 %v548_v23, %v534_v46 }
  0xe3   :  { %v242_v29 = vadd.f32 %v241_v25, %v1043_v14  ;;  %v278_v30 = vadd.f32 %v277_v26, %v263_v47 }
  0xe4   :  { %v514_v31 = vadd.f32 %v513_v27, %v1045_v15  ;;  %v550_v32 = vadd.f32 %v549_v53, %v535_v52 }
  0xe5   :  { %v243_v33 = vadd.f32 %v242_v29, %v193_v44  ;;  %v279_v37 = vadd.f32 %v278_v30, %v264_v28 }
  0xe6   :  { %v515_v38 = vadd.f32 %v514_v31, %v465_v45  ;;  %v551_v42 = vadd.f32 %v550_v32, %v536_v58 }
  0xe7   :  { %v280_v59 = vadd.f32 %v279_v37, %v265_v36  ;;  %v244_v43 = vadd.f32 %v243_v33, %v195_v35 }
  0xe8   :  { %v552_v49 = vadd.f32 %v551_v42, %v537_v39  ;;  %v516_v50 = vadd.f32 %v515_v38, %v467_v16 }
  0xe9   :  { %v245_v14 = vrot.slane %v244_v43, 4  ;;  %v281_v54 = vadd.f32 %v280_v59, %v266_v48 }
  0xea   :  { %v517_v55 = vrot.slane %v516_v50, 4  ;;  %v553_v57 = vadd.f32 %v552_v49, %v538_v51 }
  0xeb   :  { %v246_v62 = vadd.f32 %v245_v14, %v244_v43  ;;  %v282_v63 = vrot.slane %v281_v54, 4 }
  0xec   :  { %v518_v15 = vadd.f32 %v517_v55, %v516_v50  ;;  %v554_v56 = vrot.slane %v553_v57, 4 }
  0xed   :  { %v247_v0 = vrot.slane %v246_v62, 2  ;;  %v283_v44 = vadd.f32 %v282_v63, %v281_v54 }
  0xee   :  { %v519_v1 = vrot.slane %v518_v15, 2  ;;  %v555_v60 = vadd.f32 %v554_v56, %v553_v57 }
  0xef   :  { %v248_v45 = vadd.f32 %v247_v0, %v246_v62  ;;  %v284_v61 = vrot.slane %v283_v44, 2 }
  0xf0   :  { %v520_v2 = vadd.f32 %v519_v1, %v518_v15  ;;  %v556_v3 = vrot.slane %v555_v60, 2 }
  0xf1   :  { %v249_v4 = vrot.slane %v248_v45, 1  ;;  %v285_v5 = vadd.f32 %v284_v61, %v283_v44 }
  0xf2   :  { %v521_v6 = vrot.slane %v520_v2, 1  ;;  %v557_v7 = vadd.f32 %v556_v3, %v555_v60 }
  0xf3   :  { %v286_v8 = vrot.slane %v285_v5, 1  ;;  %v250_v9 = vadd.f32 %v249_v4, %v248_v45 }
  0xf4   :  { %v558_v34 = vrot.slane %v557_v7, 1  ;;  %v522_v11 = vadd.f32 %v521_v6, %v520_v2 }
  0xf5   :  { %v287_v10 = vadd.f32 %v286_v8, %v285_v5 }
  0xf6   :  { %v559_v12 = vadd.f32 %v558_v34, %v557_v7 }
  0xf7   :  { %v289_v13 = vsel %vm288_vm0, %v250_v9, %v287_v10 }
  0xf8   :  { %v291_v35 = vsel %vm290_vm1, %v289_v13, 0.0  ;;  %v560_v16 = vsel %vm288_vm0, %v522_v11, %v559_v12 }
  0xf9   :  { %292 = vst [vmem:[%s1117_s5] sm:$0xff] %v291_v35  ;;  %v561_v17 = vsel %vm290_vm1, %v560_v16, 0.0 }
  0xfa   :  { %562 = vst [vmem:[%s1118_s7] sm:$0xff] %v561_v17 }

</bundles_post_ra>
